<compile_context>
chip_gen: v7x
topology: tpu7x:2x2x1
jax: 0.10.0
libtpu: 0.0.40
codegen_flags: <defaults>
</compile_context>

<pallas_src>
import functools

import jax
import jax.numpy as jnp
from jax.experimental import pallas as pl
from jax.experimental.pallas import tpu as pltpu


# ----------------------------------------------------------------------------
# Fused Pallas kernel: L LSTM layers + FC + ReLU
# ----------------------------------------------------------------------------
def _fused_lstm_fc_kernel(L, T, B, H, *refs):
  """All LSTM layers + FC + ReLU in one kernel.

  refs layout:
    x2_ref   (T*B, Din)   time-major flattened input
    h0_ref   (L, B, H)
    c0_ref   (L, B, H)
    per layer l: w_ih_t (Din_l, 4H), w_hh_t (H, 4H), bias (1, 4H)
                 (gate order [i, f, o, g])
    w_fc_t   (H, O)
    b_fc     (1, O)
    out_ref  (B, O)
    gx_scr   (T*B, 4H)  f32 scratch  (precomputed x-projection gates, lane-dense)
    seq_scr  (T*B, H)   f32 scratch  (inter-layer hidden sequence)
  """
  x2_ref, h0_ref, c0_ref = refs[0], refs[1], refs[2]
  wih_refs = [refs[3 + 3 * l] for l in range(L)]
  whh_refs = [refs[4 + 3 * l] for l in range(L)]
  b_refs = [refs[5 + 3 * l] for l in range(L)]
  wfc_ref = refs[3 + 3 * L]
  bfc_ref = refs[4 + 3 * L]
  out_ref = refs[5 + 3 * L]
  gx_scr = refs[6 + 3 * L]
  seq_scr = refs[7 + 3 * L]

  h = None
  for l in range(L):
    # -- hoisted input projection: ONE MXU-friendly matmul per layer --------
    inp = x2_ref[...].astype(jnp.float32) if l == 0 else seq_scr[...]
    w_ih = wih_refs[l][...].astype(jnp.float32)          # hoisted, read once
    gx_scr[...] = (jnp.dot(inp, w_ih, preferred_element_type=jnp.float32)
                   + b_refs[l][...].astype(jnp.float32))

    # -- recurrence: only h @ W_hh on the serial critical path --------------
    w_hh = whh_refs[l][...].astype(jnp.float32)          # hoisted, read once
    h = h0_ref[l].astype(jnp.float32)                    # (B, H) carries in vregs
    c = c0_ref[l].astype(jnp.float32)
    for t in range(T):                                   # static -> fully unrolled
      gates = gx_scr[t * B:(t + 1) * B, :] + jnp.dot(
          h, w_hh, preferred_element_type=jnp.float32)   # (B, 4H)
      # gate order [i, f, o, g]: two contiguous activations
      sig = jax.nn.sigmoid(gates[:, :3 * H])
      g_g = jnp.tanh(gates[:, 3 * H:])
      i_g = sig[:, :H]
      f_g = sig[:, H:2 * H]
      o_g = sig[:, 2 * H:3 * H]
      c = f_g * c + i_g * g_g
      h = o_g * jnp.tanh(c)
      if l < L - 1:                                      # sequence only feeds next layer
        seq_scr[t * B:(t + 1) * B, :] = h

  # -- FC + ReLU epilogue --------------------------------------------------
  # TODO(synk): training-mode dropout (p=0.02) on the fc output is not
  # implemented (inference semantics: identity).
  y = (jnp.dot(h, wfc_ref[...].astype(jnp.float32),
               preferred_element_type=jnp.float32)
       + bfc_ref[...].astype(jnp.float32))
  out_ref[...] = jnp.maximum(y, 0.0).astype(out_ref.dtype)


# ----------------------------------------------------------------------------
# Wrapper
# ----------------------------------------------------------------------------
def _vmem():
  return pl.BlockSpec(memory_space=pltpu.MemorySpace.VMEM)


@functools.partial(jax.jit, static_argnames=("layer_num",))
def lstm_model_forward(x_btd, h0_all, c0_all, kparams, layer_num):
  """x_btd: (B, T, D). Returns relu(Linear(hn_last_layer)) of shape (B, O)."""
  B, T, D = x_btd.shape
  H = kparams["layers"][0]["w_hh_t"].shape[0]
  O = kparams["w_fc_t"].shape[1]

  # time-major, flattened for the hoisted (T*B, D) @ (D, 4H) projection
  x2 = jnp.transpose(x_btd, (1, 0, 2)).reshape(T * B, D)

  args = [x2, h0_all, c0_all]
  for p in kparams["layers"]:
    args += [p["w_ih_t"], p["w_hh_t"], p["bias"]]
  args += [kparams["w_fc_t"], kparams["b_fc"]]

  kernel = functools.partial(_fused_lstm_fc_kernel, layer_num, T, B, H)
  return pl.pallas_call(
      kernel,
      out_shape=jax.ShapeDtypeStruct((B, O), x_btd.dtype),
      in_specs=[_vmem()] * len(args),
      out_specs=_vmem(),
      scratch_shapes=[
          pltpu.VMEM((T * B, 4 * H), jnp.float32),   # x-projection gates (lane-dense)
          pltpu.VMEM((T * B, H), jnp.float32),       # inter-layer hidden sequence
      ],
  )(*args)


# ----------------------------------------------------------------------------
# Parameters (PyTorch layout) + kernel-layout prep
# ----------------------------------------------------------------------------
def init_params(key, input_dim, hidden_num, output_dim, layer_num,
                dtype=jnp.float32):
  """PyTorch-shaped LSTM/Linear params (gate order [i, f, g, o])."""
  params = {"layers": []}
  k = 1.0 / jnp.sqrt(hidden_num)
  for layer in range(layer_num):
    din = input_dim if layer == 0 else hidden_num
    key, k1, k2, k3, k4 = jax.random.split(key, 5)
    params["layers"].append({
        "w_ih": jax.random.uniform(k1, (4 * hidden_num, din), dtype, -k, k),
        "w_hh": jax.random.uniform(k2, (4 * hidden_num, hidden_num), dtype, -k, k),
        "b_ih": jax.random.uniform(k3, (4 * hidden_num,), dtype, -k, k),
        "b_hh": jax.random.uniform(k4, (4 * hidden_num,), dtype, -k, k),
    })
  key, k5, k6 = jax.random.split(key, 3)
  params["w_fc"] = jax.random.uniform(k5, (output_dim, hidden_num), dtype, -k, k)
  params["b_fc"] = jax.random.uniform(k6, (output_dim,), dtype, -k, k)
  return params, key


def _reorder_gates(m):
  """Permute gate blocks along axis 0: PyTorch [i, f, g, o] -> kernel [i, f, o, g]."""
  H = m.shape[0] // 4
  return jnp.concatenate([m[:H], m[H:2 * H], m[3 * H:], m[2 * H:3 * H]], axis=0)


def prep_kernel_params(params):
  """Transpose / permute PyTorch params into the kernel's layout."""
  kp = {"layers": []}
  for p in params["layers"]:
    h4 = p["w_ih"].shape[0]
    kp["layers"].append({
        "w_ih_t": _reorder_gates(p["w_ih"]).T,                       # (Din, 4H)
        "w_hh_t": _reorder_gates(p["w_hh"]).T,                       # (H, 4H)
        "bias": _reorder_gates(p["b_ih"] + p["b_hh"]).reshape(1, h4),
    })
  kp["w_fc_t"] = params["w_fc"].T                                    # (H, O)
  kp["b_fc"] = params["b_fc"].reshape(1, -1)                         # (1, O)
  return kp


# ----------------------------------------------------------------------------
# Pure-JAX reference (PyTorch layout / gate order) for a sanity check
# ----------------------------------------------------------------------------
def _ref_forward(x_btd, h0_all, c0_all, params, layer_num):
  seq = jnp.transpose(x_btd, (1, 0, 2))
  hT = None
  for layer in range(layer_num):
    p = params["layers"][layer]
    H = p["w_hh"].shape[1]
    w_ih_t = p["w_ih"].T
    w_hh_t = p["w_hh"].T
    b = (p["b_ih"] + p["b_hh"])[None, :]
    h = h0_all[layer]
    c = c0_all[layer]
    outs = []
    for t in range(seq.shape[0]):
      g = seq[t] @ w_ih_t + h @ w_hh_t + b
      i_g = jax.nn.sigmoid(g[:, 0 * H:1 * H])
      f_g = jax.nn.sigmoid(g[:, 1 * H:2 * H])
      g_g = jnp.tanh(g[:, 2 * H:3 * H])
      o_g = jax.nn.sigmoid(g[:, 3 * H:4 * H])
      c = f_g * c + i_g * g_g
      h = o_g * jnp.tanh(c)
      outs.append(h)
    seq = jnp.stack(outs, axis=0)
    hT = h
  return jnp.maximum(hT @ params["w_fc"].T + params["b_fc"][None, :], 0.0)


# ----------------------------------------------------------------------------
# Main
# ----------------------------------------------------------------------------
if __name__ == "__main__":
  B, T, D, H, O, L = 2, 8, 4, 32, 4, 2   # batch, seq, inputDim, hiddenNum, outputDim, layerNum

  key = jax.random.PRNGKey(0)
  params, key = init_params(key, D, H, O, L)
  kparams = prep_kernel_params(params)

  key, kx, kh, kc = jax.random.split(key, 4)
  x = jax.random.normal(kx, (B, T, D), jnp.float32)
  # The PyTorch forward draws fresh randn h0/c0 each call; drawn once here.
  h0 = jax.random.normal(kh, (L, B, H), jnp.float32)
  c0 = jax.random.normal(kc, (L, B, H), jnp.float32)

  out = lstm_model_forward(x, h0, c0, kparams, L)
  out = jax.block_until_ready(out)

  ref = _ref_forward(x, h0, c0, params, L)
  assert out.shape == (B, O)
  assert jnp.allclose(out, ref, atol=1e-5, rtol=1e-5), "mismatch vs reference"

  print("KERNEL_OK")
</pallas_src>

<mosaic_0001>
module attributes {stable_mosaic.version = 11 : i64} {
  func.func @_fused_lstm_fc_kernel(%arg0: memref<16x4xf32, #tpu.memory_space<vmem>>, %arg1: memref<2x2x32xf32, #tpu.memory_space<vmem>>, %arg2: memref<2x2x32xf32, #tpu.memory_space<vmem>>, %arg3: memref<4x128xf32, #tpu.memory_space<vmem>>, %arg4: memref<32x128xf32, #tpu.memory_space<vmem>>, %arg5: memref<1x128xf32, #tpu.memory_space<vmem>>, %arg6: memref<32x128xf32, #tpu.memory_space<vmem>>, %arg7: memref<32x128xf32, #tpu.memory_space<vmem>>, %arg8: memref<1x128xf32, #tpu.memory_space<vmem>>, %arg9: memref<32x4xf32, #tpu.memory_space<vmem>>, %arg10: memref<1x4xf32, #tpu.memory_space<vmem>>, %arg11: memref<2x4xf32, #tpu.memory_space<vmem>>, %arg12: memref<16x128xf32, #tpu.memory_space<vmem>>, %arg13: memref<16x32xf32, #tpu.memory_space<vmem>>) attributes {dimension_semantics = [], scalar_prefetch = 0 : i64, scratch_operands = 2 : i64, tpu.core_type = #tpu.core_type<tc>} {
    %c0 = arith.constant 0 : index
    %c0_0 = arith.constant 0 : index
    %0 = vector.load %arg0[%c0, %c0_0] : memref<16x4xf32, #tpu.memory_space<vmem>>, vector<16x4xf32>
    %c0_1 = arith.constant 0 : index
    %c0_2 = arith.constant 0 : index
    %1 = vector.load %arg3[%c0_1, %c0_2] : memref<4x128xf32, #tpu.memory_space<vmem>>, vector<4x128xf32>
    %cst = arith.constant dense<0.000000e+00> : vector<16x128xf32>
    %2 = tpu.matmul %0, %1, %cst {dimension_numbers = #tpu.dot_dimension_numbers<[1], [0], [0], [1], [0, 0, 1, 1], [], []>} : vector<16x4xf32>, vector<4x128xf32>, vector<16x128xf32> -> vector<16x128xf32>
    %c0_3 = arith.constant 0 : index
    %c0_4 = arith.constant 0 : index
    %3 = vector.load %arg5[%c0_3, %c0_4] : memref<1x128xf32, #tpu.memory_space<vmem>>, vector<1x128xf32>
    %4 = vector.broadcast %3 : vector<1x128xf32> to vector<16x128xf32>
    %5 = arith.addf %2, %4 : vector<16x128xf32>
    %c0_5 = arith.constant 0 : index
    %c0_6 = arith.constant 0 : index
    %6 = vector.load %arg12[%c0_5, %c0_6] : memref<16x128xf32, #tpu.memory_space<vmem>>, vector<16x128xf32>
    tpu.vector_store %arg12[%c0_5, %c0_6], %5 {strides = array<i32>} : memref<16x128xf32, #tpu.memory_space<vmem>>, vector<16x128xf32>,
    %c0_7 = arith.constant 0 : index
    %c0_8 = arith.constant 0 : index
    %7 = vector.load %arg4[%c0_7, %c0_8] : memref<32x128xf32, #tpu.memory_space<vmem>>, vector<32x128xf32>
    %c0_9 = arith.constant 0 : index
    %c0_10 = arith.constant 0 : index
    %c0_11 = arith.constant 0 : index
    %8 = vector.load %arg1[%c0_9, %c0_10, %c0_11] : memref<2x2x32xf32, #tpu.memory_space<vmem>>, vector<1x2x32xf32>
    %9 = vector.shape_cast %8 : vector<1x2x32xf32> to vector<2x32xf32>
    %c0_12 = arith.constant 0 : index
    %c0_13 = arith.constant 0 : index
    %c0_14 = arith.constant 0 : index
    %10 = vector.load %arg2[%c0_12, %c0_13, %c0_14] : memref<2x2x32xf32, #tpu.memory_space<vmem>>, vector<1x2x32xf32>
    %11 = vector.shape_cast %10 : vector<1x2x32xf32> to vector<2x32xf32>
    %c0_15 = arith.constant 0 : index
    %c0_16 = arith.constant 0 : index
    %12 = vector.load %arg12[%c0_15, %c0_16] : memref<16x128xf32, #tpu.memory_space<vmem>>, vector<2x128xf32>
    %cst_17 = arith.constant dense<0.000000e+00> : vector<2x128xf32>
    %13 = tpu.matmul %9, %7, %cst_17 {dimension_numbers = #tpu.dot_dimension_numbers<[1], [0], [0], [1], [0, 0, 1, 1], [], []>} : vector<2x32xf32>, vector<32x128xf32>, vector<2x128xf32> -> vector<2x128xf32>
    %14 = arith.addf %12, %13 : vector<2x128xf32>
    %15 = vector.extract_strided_slice %14 {offsets = [0, 0], sizes = [2, 96], strides = [1, 1]} : vector<2x128xf32> to vector<2x96xf32>
    %16 = arith.negf %15 : vector<2x96xf32>
    %17 = math.exp %16 : vector<2x96xf32>
    %cst_18 = arith.constant 1.000000e+00 : f32
    %18 = vector.broadcast %cst_18 : f32 to vector<2x96xf32>
    %19 = arith.addf %18, %17 : vector<2x96xf32>
    %20 = arith.divf %18, %19 : vector<2x96xf32>
    %21 = vector.extract_strided_slice %14 {offsets = [0, 96], sizes = [2, 32], strides = [1, 1]} : vector<2x128xf32> to vector<2x32xf32>
    %22 = math.tanh %21 : vector<2x32xf32>
    %23 = vector.extract_strided_slice %20 {offsets = [0, 0], sizes = [2, 32], strides = [1, 1]} : vector<2x96xf32> to vector<2x32xf32>
    %24 = vector.extract_strided_slice %20 {offsets = [0, 32], sizes = [2, 32], strides = [1, 1]} : vector<2x96xf32> to vector<2x32xf32>
    %25 = vector.extract_strided_slice %20 {offsets = [0, 64], sizes = [2, 32], strides = [1, 1]} : vector<2x96xf32> to vector<2x32xf32>
    %26 = arith.mulf %24, %11 : vector<2x32xf32>
    %27 = arith.mulf %23, %22 : vector<2x32xf32>
    %28 = arith.addf %26, %27 : vector<2x32xf32>
    %29 = math.tanh %28 : vector<2x32xf32>
    %30 = arith.mulf %25, %29 : vector<2x32xf32>
    %c0_19 = arith.constant 0 : index
    %c0_20 = arith.constant 0 : index
    %31 = vector.load %arg13[%c0_19, %c0_20] : memref<16x32xf32, #tpu.memory_space<vmem>>, vector<2x32xf32>
    tpu.vector_store %arg13[%c0_19, %c0_20], %30 {strides = array<i32>} : memref<16x32xf32, #tpu.memory_space<vmem>>, vector<2x32xf32>,
    %c2 = arith.constant 2 : index
    %c0_21 = arith.constant 0 : index
    %32 = vector.load %arg12[%c2, %c0_21] : memref<16x128xf32, #tpu.memory_space<vmem>>, vector<2x128xf32>
    %cst_22 = arith.constant dense<0.000000e+00> : vector<2x128xf32>
    %33 = tpu.matmul %30, %7, %cst_22 {dimension_numbers = #tpu.dot_dimension_numbers<[1], [0], [0], [1], [0, 0, 1, 1], [], []>} : vector<2x32xf32>, vector<32x128xf32>, vector<2x128xf32> -> vector<2x128xf32>
    %34 = arith.addf %32, %33 : vector<2x128xf32>
    %35 = vector.extract_strided_slice %34 {offsets = [0, 0], sizes = [2, 96], strides = [1, 1]} : vector<2x128xf32> to vector<2x96xf32>
    %36 = arith.negf %35 : vector<2x96xf32>
    %37 = math.exp %36 : vector<2x96xf32>
    %cst_23 = arith.constant 1.000000e+00 : f32
    %38 = vector.broadcast %cst_23 : f32 to vector<2x96xf32>
    %39 = arith.addf %38, %37 : vector<2x96xf32>
    %40 = arith.divf %38, %39 : vector<2x96xf32>
    %41 = vector.extract_strided_slice %34 {offsets = [0, 96], sizes = [2, 32], strides = [1, 1]} : vector<2x128xf32> to vector<2x32xf32>
    %42 = math.tanh %41 : vector<2x32xf32>
    %43 = vector.extract_strided_slice %40 {offsets = [0, 0], sizes = [2, 32], strides = [1, 1]} : vector<2x96xf32> to vector<2x32xf32>
    %44 = vector.extract_strided_slice %40 {offsets = [0, 32], sizes = [2, 32], strides = [1, 1]} : vector<2x96xf32> to vector<2x32xf32>
    %45 = vector.extract_strided_slice %40 {offsets = [0, 64], sizes = [2, 32], strides = [1, 1]} : vector<2x96xf32> to vector<2x32xf32>
    %46 = arith.mulf %44, %28 : vector<2x32xf32>
    %47 = arith.mulf %43, %42 : vector<2x32xf32>
    %48 = arith.addf %46, %47 : vector<2x32xf32>
    %49 = math.tanh %48 : vector<2x32xf32>
    %50 = arith.mulf %45, %49 : vector<2x32xf32>
    %c2_24 = arith.constant 2 : index
    %c0_25 = arith.constant 0 : index
    %51 = vector.load %arg13[%c2_24, %c0_25] : memref<16x32xf32, #tpu.memory_space<vmem>>, vector<2x32xf32>
    tpu.vector_store %arg13[%c2_24, %c0_25], %50 {strides = array<i32>} : memref<16x32xf32, #tpu.memory_space<vmem>>, vector<2x32xf32>,
    %c4 = arith.constant 4 : index
    %c0_26 = arith.constant 0 : index
    %52 = vector.load %arg12[%c4, %c0_26] : memref<16x128xf32, #tpu.memory_space<vmem>>, vector<2x128xf32>
    %cst_27 = arith.constant dense<0.000000e+00> : vector<2x128xf32>
    %53 = tpu.matmul %50, %7, %cst_27 {dimension_numbers = #tpu.dot_dimension_numbers<[1], [0], [0], [1], [0, 0, 1, 1], [], []>} : vector<2x32xf32>, vector<32x128xf32>, vector<2x128xf32> -> vector<2x128xf32>
    %54 = arith.addf %52, %53 : vector<2x128xf32>
    %55 = vector.extract_strided_slice %54 {offsets = [0, 0], sizes = [2, 96], strides = [1, 1]} : vector<2x128xf32> to vector<2x96xf32>
    %56 = arith.negf %55 : vector<2x96xf32>
    %57 = math.exp %56 : vector<2x96xf32>
    %cst_28 = arith.constant 1.000000e+00 : f32
    %58 = vector.broadcast %cst_28 : f32 to vector<2x96xf32>
    %59 = arith.addf %58, %57 : vector<2x96xf32>
    %60 = arith.divf %58, %59 : vector<2x96xf32>
    %61 = vector.extract_strided_slice %54 {offsets = [0, 96], sizes = [2, 32], strides = [1, 1]} : vector<2x128xf32> to vector<2x32xf32>
    %62 = math.tanh %61 : vector<2x32xf32>
    %63 = vector.extract_strided_slice %60 {offsets = [0, 0], sizes = [2, 32], strides = [1, 1]} : vector<2x96xf32> to vector<2x32xf32>
    %64 = vector.extract_strided_slice %60 {offsets = [0, 32], sizes = [2, 32], strides = [1, 1]} : vector<2x96xf32> to vector<2x32xf32>
    %65 = vector.extract_strided_slice %60 {offsets = [0, 64], sizes = [2, 32], strides = [1, 1]} : vector<2x96xf32> to vector<2x32xf32>
    %66 = arith.mulf %64, %48 : vector<2x32xf32>
    %67 = arith.mulf %63, %62 : vector<2x32xf32>
    %68 = arith.addf %66, %67 : vector<2x32xf32>
    %69 = math.tanh %68 : vector<2x32xf32>
    %70 = arith.mulf %65, %69 : vector<2x32xf32>
    %c4_29 = arith.constant 4 : index
    %c0_30 = arith.constant 0 : index
    %71 = vector.load %arg13[%c4_29, %c0_30] : memref<16x32xf32, #tpu.memory_space<vmem>>, vector<2x32xf32>
    tpu.vector_store %arg13[%c4_29, %c0_30], %70 {strides = array<i32>} : memref<16x32xf32, #tpu.memory_space<vmem>>, vector<2x32xf32>,
    %c6 = arith.constant 6 : index
    %c0_31 = arith.constant 0 : index
    %72 = vector.load %arg12[%c6, %c0_31] : memref<16x128xf32, #tpu.memory_space<vmem>>, vector<2x128xf32>
    %cst_32 = arith.constant dense<0.000000e+00> : vector<2x128xf32>
    %73 = tpu.matmul %70, %7, %cst_32 {dimension_numbers = #tpu.dot_dimension_numbers<[1], [0], [0], [1], [0, 0, 1, 1], [], []>} : vector<2x32xf32>, vector<32x128xf32>, vector<2x128xf32> -> vector<2x128xf32>
    %74 = arith.addf %72, %73 : vector<2x128xf32>
    %75 = vector.extract_strided_slice %74 {offsets = [0, 0], sizes = [2, 96], strides = [1, 1]} : vector<2x128xf32> to vector<2x96xf32>
    %76 = arith.negf %75 : vector<2x96xf32>
    %77 = math.exp %76 : vector<2x96xf32>
    %cst_33 = arith.constant 1.000000e+00 : f32
    %78 = vector.broadcast %cst_33 : f32 to vector<2x96xf32>
    %79 = arith.addf %78, %77 : vector<2x96xf32>
    %80 = arith.divf %78, %79 : vector<2x96xf32>
    %81 = vector.extract_strided_slice %74 {offsets = [0, 96], sizes = [2, 32], strides = [1, 1]} : vector<2x128xf32> to vector<2x32xf32>
    %82 = math.tanh %81 : vector<2x32xf32>
    %83 = vector.extract_strided_slice %80 {offsets = [0, 0], sizes = [2, 32], strides = [1, 1]} : vector<2x96xf32> to vector<2x32xf32>
    %84 = vector.extract_strided_slice %80 {offsets = [0, 32], sizes = [2, 32], strides = [1, 1]} : vector<2x96xf32> to vector<2x32xf32>
    %85 = vector.extract_strided_slice %80 {offsets = [0, 64], sizes = [2, 32], strides = [1, 1]} : vector<2x96xf32> to vector<2x32xf32>
    %86 = arith.mulf %84, %68 : vector<2x32xf32>
    %87 = arith.mulf %83, %82 : vector<2x32xf32>
    %88 = arith.addf %86, %87 : vector<2x32xf32>
    %89 = math.tanh %88 : vector<2x32xf32>
    %90 = arith.mulf %85, %89 : vector<2x32xf32>
    %c6_34 = arith.constant 6 : index
    %c0_35 = arith.constant 0 : index
    %91 = vector.load %arg13[%c6_34, %c0_35] : memref<16x32xf32, #tpu.memory_space<vmem>>, vector<2x32xf32>
    tpu.vector_store %arg13[%c6_34, %c0_35], %90 {strides = array<i32>} : memref<16x32xf32, #tpu.memory_space<vmem>>, vector<2x32xf32>,
    %c8 = arith.constant 8 : index
    %c0_36 = arith.constant 0 : index
    %92 = vector.load %arg12[%c8, %c0_36] : memref<16x128xf32, #tpu.memory_space<vmem>>, vector<2x128xf32>
    %cst_37 = arith.constant dense<0.000000e+00> : vector<2x128xf32>
    %93 = tpu.matmul %90, %7, %cst_37 {dimension_numbers = #tpu.dot_dimension_numbers<[1], [0], [0], [1], [0, 0, 1, 1], [], []>} : vector<2x32xf32>, vector<32x128xf32>, vector<2x128xf32> -> vector<2x128xf32>
    %94 = arith.addf %92, %93 : vector<2x128xf32>
    %95 = vector.extract_strided_slice %94 {offsets = [0, 0], sizes = [2, 96], strides = [1, 1]} : vector<2x128xf32> to vector<2x96xf32>
    %96 = arith.negf %95 : vector<2x96xf32>
    %97 = math.exp %96 : vector<2x96xf32>
    %cst_38 = arith.constant 1.000000e+00 : f32
    %98 = vector.broadcast %cst_38 : f32 to vector<2x96xf32>
    %99 = arith.addf %98, %97 : vector<2x96xf32>
    %100 = arith.divf %98, %99 : vector<2x96xf32>
    %101 = vector.extract_strided_slice %94 {offsets = [0, 96], sizes = [2, 32], strides = [1, 1]} : vector<2x128xf32> to vector<2x32xf32>
    %102 = math.tanh %101 : vector<2x32xf32>
    %103 = vector.extract_strided_slice %100 {offsets = [0, 0], sizes = [2, 32], strides = [1, 1]} : vector<2x96xf32> to vector<2x32xf32>
    %104 = vector.extract_strided_slice %100 {offsets = [0, 32], sizes = [2, 32], strides = [1, 1]} : vector<2x96xf32> to vector<2x32xf32>
    %105 = vector.extract_strided_slice %100 {offsets = [0, 64], sizes = [2, 32], strides = [1, 1]} : vector<2x96xf32> to vector<2x32xf32>
    %106 = arith.mulf %104, %88 : vector<2x32xf32>
    %107 = arith.mulf %103, %102 : vector<2x32xf32>
    %108 = arith.addf %106, %107 : vector<2x32xf32>
    %109 = math.tanh %108 : vector<2x32xf32>
    %110 = arith.mulf %105, %109 : vector<2x32xf32>
    %c8_39 = arith.constant 8 : index
    %c0_40 = arith.constant 0 : index
    %111 = vector.load %arg13[%c8_39, %c0_40] : memref<16x32xf32, #tpu.memory_space<vmem>>, vector<2x32xf32>
    tpu.vector_store %arg13[%c8_39, %c0_40], %110 {strides = array<i32>} : memref<16x32xf32, #tpu.memory_space<vmem>>, vector<2x32xf32>,
    %c10 = arith.constant 10 : index
    %c0_41 = arith.constant 0 : index
    %112 = vector.load %arg12[%c10, %c0_41] : memref<16x128xf32, #tpu.memory_space<vmem>>, vector<2x128xf32>
    %cst_42 = arith.constant dense<0.000000e+00> : vector<2x128xf32>
    %113 = tpu.matmul %110, %7, %cst_42 {dimension_numbers = #tpu.dot_dimension_numbers<[1], [0], [0], [1], [0, 0, 1, 1], [], []>} : vector<2x32xf32>, vector<32x128xf32>, vector<2x128xf32> -> vector<2x128xf32>
    %114 = arith.addf %112, %113 : vector<2x128xf32>
    %115 = vector.extract_strided_slice %114 {offsets = [0, 0], sizes = [2, 96], strides = [1, 1]} : vector<2x128xf32> to vector<2x96xf32>
    %116 = arith.negf %115 : vector<2x96xf32>
    %117 = math.exp %116 : vector<2x96xf32>
    %cst_43 = arith.constant 1.000000e+00 : f32
    %118 = vector.broadcast %cst_43 : f32 to vector<2x96xf32>
    %119 = arith.addf %118, %117 : vector<2x96xf32>
    %120 = arith.divf %118, %119 : vector<2x96xf32>
    %121 = vector.extract_strided_slice %114 {offsets = [0, 96], sizes = [2, 32], strides = [1, 1]} : vector<2x128xf32> to vector<2x32xf32>
    %122 = math.tanh %121 : vector<2x32xf32>
    %123 = vector.extract_strided_slice %120 {offsets = [0, 0], sizes = [2, 32], strides = [1, 1]} : vector<2x96xf32> to vector<2x32xf32>
    %124 = vector.extract_strided_slice %120 {offsets = [0, 32], sizes = [2, 32], strides = [1, 1]} : vector<2x96xf32> to vector<2x32xf32>
    %125 = vector.extract_strided_slice %120 {offsets = [0, 64], sizes = [2, 32], strides = [1, 1]} : vector<2x96xf32> to vector<2x32xf32>
    %126 = arith.mulf %124, %108 : vector<2x32xf32>
    %127 = arith.mulf %123, %122 : vector<2x32xf32>
    %128 = arith.addf %126, %127 : vector<2x32xf32>
    %129 = math.tanh %128 : vector<2x32xf32>
    %130 = arith.mulf %125, %129 : vector<2x32xf32>
    %c10_44 = arith.constant 10 : index
    %c0_45 = arith.constant 0 : index
    %131 = vector.load %arg13[%c10_44, %c0_45] : memref<16x32xf32, #tpu.memory_space<vmem>>, vector<2x32xf32>
    tpu.vector_store %arg13[%c10_44, %c0_45], %130 {strides = array<i32>} : memref<16x32xf32, #tpu.memory_space<vmem>>, vector<2x32xf32>,
    %c12 = arith.constant 12 : index
    %c0_46 = arith.constant 0 : index
    %132 = vector.load %arg12[%c12, %c0_46] : memref<16x128xf32, #tpu.memory_space<vmem>>, vector<2x128xf32>
    %cst_47 = arith.constant dense<0.000000e+00> : vector<2x128xf32>
    %133 = tpu.matmul %130, %7, %cst_47 {dimension_numbers = #tpu.dot_dimension_numbers<[1], [0], [0], [1], [0, 0, 1, 1], [], []>} : vector<2x32xf32>, vector<32x128xf32>, vector<2x128xf32> -> vector<2x128xf32>
    %134 = arith.addf %132, %133 : vector<2x128xf32>
    %135 = vector.extract_strided_slice %134 {offsets = [0, 0], sizes = [2, 96], strides = [1, 1]} : vector<2x128xf32> to vector<2x96xf32>
    %136 = arith.negf %135 : vector<2x96xf32>
    %137 = math.exp %136 : vector<2x96xf32>
    %cst_48 = arith.constant 1.000000e+00 : f32
    %138 = vector.broadcast %cst_48 : f32 to vector<2x96xf32>
    %139 = arith.addf %138, %137 : vector<2x96xf32>
    %140 = arith.divf %138, %139 : vector<2x96xf32>
    %141 = vector.extract_strided_slice %134 {offsets = [0, 96], sizes = [2, 32], strides = [1, 1]} : vector<2x128xf32> to vector<2x32xf32>
    %142 = math.tanh %141 : vector<2x32xf32>
    %143 = vector.extract_strided_slice %140 {offsets = [0, 0], sizes = [2, 32], strides = [1, 1]} : vector<2x96xf32> to vector<2x32xf32>
    %144 = vector.extract_strided_slice %140 {offsets = [0, 32], sizes = [2, 32], strides = [1, 1]} : vector<2x96xf32> to vector<2x32xf32>
    %145 = vector.extract_strided_slice %140 {offsets = [0, 64], sizes = [2, 32], strides = [1, 1]} : vector<2x96xf32> to vector<2x32xf32>
    %146 = arith.mulf %144, %128 : vector<2x32xf32>
    %147 = arith.mulf %143, %142 : vector<2x32xf32>
    %148 = arith.addf %146, %147 : vector<2x32xf32>
    %149 = math.tanh %148 : vector<2x32xf32>
    %150 = arith.mulf %145, %149 : vector<2x32xf32>
    %c12_49 = arith.constant 12 : index
    %c0_50 = arith.constant 0 : index
    %151 = vector.load %arg13[%c12_49, %c0_50] : memref<16x32xf32, #tpu.memory_space<vmem>>, vector<2x32xf32>
    tpu.vector_store %arg13[%c12_49, %c0_50], %150 {strides = array<i32>} : memref<16x32xf32, #tpu.memory_space<vmem>>, vector<2x32xf32>,
    %c14 = arith.constant 14 : index
    %c0_51 = arith.constant 0 : index
    %152 = vector.load %arg12[%c14, %c0_51] : memref<16x128xf32, #tpu.memory_space<vmem>>, vector<2x128xf32>
    %cst_52 = arith.constant dense<0.000000e+00> : vector<2x128xf32>
    %153 = tpu.matmul %150, %7, %cst_52 {dimension_numbers = #tpu.dot_dimension_numbers<[1], [0], [0], [1], [0, 0, 1, 1], [], []>} : vector<2x32xf32>, vector<32x128xf32>, vector<2x128xf32> -> vector<2x128xf32>
    %154 = arith.addf %152, %153 : vector<2x128xf32>
    %155 = vector.extract_strided_slice %154 {offsets = [0, 0], sizes = [2, 96], strides = [1, 1]} : vector<2x128xf32> to vector<2x96xf32>
    %156 = arith.negf %155 : vector<2x96xf32>
    %157 = math.exp %156 : vector<2x96xf32>
    %cst_53 = arith.constant 1.000000e+00 : f32
    %158 = vector.broadcast %cst_53 : f32 to vector<2x96xf32>
    %159 = arith.addf %158, %157 : vector<2x96xf32>
    %160 = arith.divf %158, %159 : vector<2x96xf32>
    %161 = vector.extract_strided_slice %154 {offsets = [0, 96], sizes = [2, 32], strides = [1, 1]} : vector<2x128xf32> to vector<2x32xf32>
    %162 = math.tanh %161 : vector<2x32xf32>
    %163 = vector.extract_strided_slice %160 {offsets = [0, 0], sizes = [2, 32], strides = [1, 1]} : vector<2x96xf32> to vector<2x32xf32>
    %164 = vector.extract_strided_slice %160 {offsets = [0, 32], sizes = [2, 32], strides = [1, 1]} : vector<2x96xf32> to vector<2x32xf32>
    %165 = vector.extract_strided_slice %160 {offsets = [0, 64], sizes = [2, 32], strides = [1, 1]} : vector<2x96xf32> to vector<2x32xf32>
    %166 = arith.mulf %164, %148 : vector<2x32xf32>
    %167 = arith.mulf %163, %162 : vector<2x32xf32>
    %168 = arith.addf %166, %167 : vector<2x32xf32>
    %169 = math.tanh %168 : vector<2x32xf32>
    %170 = arith.mulf %165, %169 : vector<2x32xf32>
    %c14_54 = arith.constant 14 : index
    %c0_55 = arith.constant 0 : index
    %171 = vector.load %arg13[%c14_54, %c0_55] : memref<16x32xf32, #tpu.memory_space<vmem>>, vector<2x32xf32>
    tpu.vector_store %arg13[%c14_54, %c0_55], %170 {strides = array<i32>} : memref<16x32xf32, #tpu.memory_space<vmem>>, vector<2x32xf32>,
    %c0_56 = arith.constant 0 : index
    %c0_57 = arith.constant 0 : index
    %172 = vector.load %arg13[%c0_56, %c0_57] : memref<16x32xf32, #tpu.memory_space<vmem>>, vector<16x32xf32>
    %c0_58 = arith.constant 0 : index
    %c0_59 = arith.constant 0 : index
    %173 = vector.load %arg6[%c0_58, %c0_59] : memref<32x128xf32, #tpu.memory_space<vmem>>, vector<32x128xf32>
    %cst_60 = arith.constant dense<0.000000e+00> : vector<16x128xf32>
    %174 = tpu.matmul %172, %173, %cst_60 {dimension_numbers = #tpu.dot_dimension_numbers<[1], [0], [0], [1], [0, 0, 1, 1], [], []>} : vector<16x32xf32>, vector<32x128xf32>, vector<16x128xf32> -> vector<16x128xf32>
    %c0_61 = arith.constant 0 : index
    %c0_62 = arith.constant 0 : index
    %175 = vector.load %arg8[%c0_61, %c0_62] : memref<1x128xf32, #tpu.memory_space<vmem>>, vector<1x128xf32>
    %176 = vector.broadcast %175 : vector<1x128xf32> to vector<16x128xf32>
    %177 = arith.addf %174, %176 : vector<16x128xf32>
    %c0_63 = arith.constant 0 : index
    %c0_64 = arith.constant 0 : index
    %178 = vector.load %arg12[%c0_63, %c0_64] : memref<16x128xf32, #tpu.memory_space<vmem>>, vector<16x128xf32>
    tpu.vector_store %arg12[%c0_63, %c0_64], %177 {strides = array<i32>} : memref<16x128xf32, #tpu.memory_space<vmem>>, vector<16x128xf32>,
    %c0_65 = arith.constant 0 : index
    %c0_66 = arith.constant 0 : index
    %179 = vector.load %arg7[%c0_65, %c0_66] : memref<32x128xf32, #tpu.memory_space<vmem>>, vector<32x128xf32>
    %c1 = arith.constant 1 : index
    %c0_67 = arith.constant 0 : index
    %c0_68 = arith.constant 0 : index
    %180 = vector.load %arg1[%c1, %c0_67, %c0_68] : memref<2x2x32xf32, #tpu.memory_space<vmem>>, vector<1x2x32xf32>
    %181 = vector.shape_cast %180 : vector<1x2x32xf32> to vector<2x32xf32>
    %c1_69 = arith.constant 1 : index
    %c0_70 = arith.constant 0 : index
    %c0_71 = arith.constant 0 : index
    %182 = vector.load %arg2[%c1_69, %c0_70, %c0_71] : memref<2x2x32xf32, #tpu.memory_space<vmem>>, vector<1x2x32xf32>
    %183 = vector.shape_cast %182 : vector<1x2x32xf32> to vector<2x32xf32>
    %c0_72 = arith.constant 0 : index
    %c0_73 = arith.constant 0 : index
    %184 = vector.load %arg12[%c0_72, %c0_73] : memref<16x128xf32, #tpu.memory_space<vmem>>, vector<2x128xf32>
    %cst_74 = arith.constant dense<0.000000e+00> : vector<2x128xf32>
    %185 = tpu.matmul %181, %179, %cst_74 {dimension_numbers = #tpu.dot_dimension_numbers<[1], [0], [0], [1], [0, 0, 1, 1], [], []>} : vector<2x32xf32>, vector<32x128xf32>, vector<2x128xf32> -> vector<2x128xf32>
    %186 = arith.addf %184, %185 : vector<2x128xf32>
    %187 = vector.extract_strided_slice %186 {offsets = [0, 0], sizes = [2, 96], strides = [1, 1]} : vector<2x128xf32> to vector<2x96xf32>
    %188 = arith.negf %187 : vector<2x96xf32>
    %189 = math.exp %188 : vector<2x96xf32>
    %cst_75 = arith.constant 1.000000e+00 : f32
    %190 = vector.broadcast %cst_75 : f32 to vector<2x96xf32>
    %191 = arith.addf %190, %189 : vector<2x96xf32>
    %192 = arith.divf %190, %191 : vector<2x96xf32>
    %193 = vector.extract_strided_slice %186 {offsets = [0, 96], sizes = [2, 32], strides = [1, 1]} : vector<2x128xf32> to vector<2x32xf32>
    %194 = math.tanh %193 : vector<2x32xf32>
    %195 = vector.extract_strided_slice %192 {offsets = [0, 0], sizes = [2, 32], strides = [1, 1]} : vector<2x96xf32> to vector<2x32xf32>
    %196 = vector.extract_strided_slice %192 {offsets = [0, 32], sizes = [2, 32], strides = [1, 1]} : vector<2x96xf32> to vector<2x32xf32>
    %197 = vector.extract_strided_slice %192 {offsets = [0, 64], sizes = [2, 32], strides = [1, 1]} : vector<2x96xf32> to vector<2x32xf32>
    %198 = arith.mulf %196, %183 : vector<2x32xf32>
    %199 = arith.mulf %195, %194 : vector<2x32xf32>
    %200 = arith.addf %198, %199 : vector<2x32xf32>
    %201 = math.tanh %200 : vector<2x32xf32>
    %202 = arith.mulf %197, %201 : vector<2x32xf32>
    %c2_76 = arith.constant 2 : index
    %c0_77 = arith.constant 0 : index
    %203 = vector.load %arg12[%c2_76, %c0_77] : memref<16x128xf32, #tpu.memory_space<vmem>>, vector<2x128xf32>
    %cst_78 = arith.constant dense<0.000000e+00> : vector<2x128xf32>
    %204 = tpu.matmul %202, %179, %cst_78 {dimension_numbers = #tpu.dot_dimension_numbers<[1], [0], [0], [1], [0, 0, 1, 1], [], []>} : vector<2x32xf32>, vector<32x128xf32>, vector<2x128xf32> -> vector<2x128xf32>
    %205 = arith.addf %203, %204 : vector<2x128xf32>
    %206 = vector.extract_strided_slice %205 {offsets = [0, 0], sizes = [2, 96], strides = [1, 1]} : vector<2x128xf32> to vector<2x96xf32>
    %207 = arith.negf %206 : vector<2x96xf32>
    %208 = math.exp %207 : vector<2x96xf32>
    %cst_79 = arith.constant 1.000000e+00 : f32
    %209 = vector.broadcast %cst_79 : f32 to vector<2x96xf32>
    %210 = arith.addf %209, %208 : vector<2x96xf32>
    %211 = arith.divf %209, %210 : vector<2x96xf32>
    %212 = vector.extract_strided_slice %205 {offsets = [0, 96], sizes = [2, 32], strides = [1, 1]} : vector<2x128xf32> to vector<2x32xf32>
    %213 = math.tanh %212 : vector<2x32xf32>
    %214 = vector.extract_strided_slice %211 {offsets = [0, 0], sizes = [2, 32], strides = [1, 1]} : vector<2x96xf32> to vector<2x32xf32>
    %215 = vector.extract_strided_slice %211 {offsets = [0, 32], sizes = [2, 32], strides = [1, 1]} : vector<2x96xf32> to vector<2x32xf32>
    %216 = vector.extract_strided_slice %211 {offsets = [0, 64], sizes = [2, 32], strides = [1, 1]} : vector<2x96xf32> to vector<2x32xf32>
    %217 = arith.mulf %215, %200 : vector<2x32xf32>
    %218 = arith.mulf %214, %213 : vector<2x32xf32>
    %219 = arith.addf %217, %218 : vector<2x32xf32>
    %220 = math.tanh %219 : vector<2x32xf32>
    %221 = arith.mulf %216, %220 : vector<2x32xf32>
    %c4_80 = arith.constant 4 : index
    %c0_81 = arith.constant 0 : index
    %222 = vector.load %arg12[%c4_80, %c0_81] : memref<16x128xf32, #tpu.memory_space<vmem>>, vector<2x128xf32>
    %cst_82 = arith.constant dense<0.000000e+00> : vector<2x128xf32>
    %223 = tpu.matmul %221, %179, %cst_82 {dimension_numbers = #tpu.dot_dimension_numbers<[1], [0], [0], [1], [0, 0, 1, 1], [], []>} : vector<2x32xf32>, vector<32x128xf32>, vector<2x128xf32> -> vector<2x128xf32>
    %224 = arith.addf %222, %223 : vector<2x128xf32>
    %225 = vector.extract_strided_slice %224 {offsets = [0, 0], sizes = [2, 96], strides = [1, 1]} : vector<2x128xf32> to vector<2x96xf32>
    %226 = arith.negf %225 : vector<2x96xf32>
    %227 = math.exp %226 : vector<2x96xf32>
    %cst_83 = arith.constant 1.000000e+00 : f32
    %228 = vector.broadcast %cst_83 : f32 to vector<2x96xf32>
    %229 = arith.addf %228, %227 : vector<2x96xf32>
    %230 = arith.divf %228, %229 : vector<2x96xf32>
    %231 = vector.extract_strided_slice %224 {offsets = [0, 96], sizes = [2, 32], strides = [1, 1]} : vector<2x128xf32> to vector<2x32xf32>
    %232 = math.tanh %231 : vector<2x32xf32>
    %233 = vector.extract_strided_slice %230 {offsets = [0, 0], sizes = [2, 32], strides = [1, 1]} : vector<2x96xf32> to vector<2x32xf32>
    %234 = vector.extract_strided_slice %230 {offsets = [0, 32], sizes = [2, 32], strides = [1, 1]} : vector<2x96xf32> to vector<2x32xf32>
    %235 = vector.extract_strided_slice %230 {offsets = [0, 64], sizes = [2, 32], strides = [1, 1]} : vector<2x96xf32> to vector<2x32xf32>
    %236 = arith.mulf %234, %219 : vector<2x32xf32>
    %237 = arith.mulf %233, %232 : vector<2x32xf32>
    %238 = arith.addf %236, %237 : vector<2x32xf32>
    %239 = math.tanh %238 : vector<2x32xf32>
    %240 = arith.mulf %235, %239 : vector<2x32xf32>
    %c6_84 = arith.constant 6 : index
    %c0_85 = arith.constant 0 : index
    %241 = vector.load %arg12[%c6_84, %c0_85] : memref<16x128xf32, #tpu.memory_space<vmem>>, vector<2x128xf32>
    %cst_86 = arith.constant dense<0.000000e+00> : vector<2x128xf32>
    %242 = tpu.matmul %240, %179, %cst_86 {dimension_numbers = #tpu.dot_dimension_numbers<[1], [0], [0], [1], [0, 0, 1, 1], [], []>} : vector<2x32xf32>, vector<32x128xf32>, vector<2x128xf32> -> vector<2x128xf32>
    %243 = arith.addf %241, %242 : vector<2x128xf32>
    %244 = vector.extract_strided_slice %243 {offsets = [0, 0], sizes = [2, 96], strides = [1, 1]} : vector<2x128xf32> to vector<2x96xf32>
    %245 = arith.negf %244 : vector<2x96xf32>
    %246 = math.exp %245 : vector<2x96xf32>
    %cst_87 = arith.constant 1.000000e+00 : f32
    %247 = vector.broadcast %cst_87 : f32 to vector<2x96xf32>
    %248 = arith.addf %247, %246 : vector<2x96xf32>
    %249 = arith.divf %247, %248 : vector<2x96xf32>
    %250 = vector.extract_strided_slice %243 {offsets = [0, 96], sizes = [2, 32], strides = [1, 1]} : vector<2x128xf32> to vector<2x32xf32>
    %251 = math.tanh %250 : vector<2x32xf32>
    %252 = vector.extract_strided_slice %249 {offsets = [0, 0], sizes = [2, 32], strides = [1, 1]} : vector<2x96xf32> to vector<2x32xf32>
    %253 = vector.extract_strided_slice %249 {offsets = [0, 32], sizes = [2, 32], strides = [1, 1]} : vector<2x96xf32> to vector<2x32xf32>
    %254 = vector.extract_strided_slice %249 {offsets = [0, 64], sizes = [2, 32], strides = [1, 1]} : vector<2x96xf32> to vector<2x32xf32>
    %255 = arith.mulf %253, %238 : vector<2x32xf32>
    %256 = arith.mulf %252, %251 : vector<2x32xf32>
    %257 = arith.addf %255, %256 : vector<2x32xf32>
    %258 = math.tanh %257 : vector<2x32xf32>
    %259 = arith.mulf %254, %258 : vector<2x32xf32>
    %c8_88 = arith.constant 8 : index
    %c0_89 = arith.constant 0 : index
    %260 = vector.load %arg12[%c8_88, %c0_89] : memref<16x128xf32, #tpu.memory_space<vmem>>, vector<2x128xf32>
    %cst_90 = arith.constant dense<0.000000e+00> : vector<2x128xf32>
    %261 = tpu.matmul %259, %179, %cst_90 {dimension_numbers = #tpu.dot_dimension_numbers<[1], [0], [0], [1], [0, 0, 1, 1], [], []>} : vector<2x32xf32>, vector<32x128xf32>, vector<2x128xf32> -> vector<2x128xf32>
    %262 = arith.addf %260, %261 : vector<2x128xf32>
    %263 = vector.extract_strided_slice %262 {offsets = [0, 0], sizes = [2, 96], strides = [1, 1]} : vector<2x128xf32> to vector<2x96xf32>
    %264 = arith.negf %263 : vector<2x96xf32>
    %265 = math.exp %264 : vector<2x96xf32>
    %cst_91 = arith.constant 1.000000e+00 : f32
    %266 = vector.broadcast %cst_91 : f32 to vector<2x96xf32>
    %267 = arith.addf %266, %265 : vector<2x96xf32>
    %268 = arith.divf %266, %267 : vector<2x96xf32>
    %269 = vector.extract_strided_slice %262 {offsets = [0, 96], sizes = [2, 32], strides = [1, 1]} : vector<2x128xf32> to vector<2x32xf32>
    %270 = math.tanh %269 : vector<2x32xf32>
    %271 = vector.extract_strided_slice %268 {offsets = [0, 0], sizes = [2, 32], strides = [1, 1]} : vector<2x96xf32> to vector<2x32xf32>
    %272 = vector.extract_strided_slice %268 {offsets = [0, 32], sizes = [2, 32], strides = [1, 1]} : vector<2x96xf32> to vector<2x32xf32>
    %273 = vector.extract_strided_slice %268 {offsets = [0, 64], sizes = [2, 32], strides = [1, 1]} : vector<2x96xf32> to vector<2x32xf32>
    %274 = arith.mulf %272, %257 : vector<2x32xf32>
    %275 = arith.mulf %271, %270 : vector<2x32xf32>
    %276 = arith.addf %274, %275 : vector<2x32xf32>
    %277 = math.tanh %276 : vector<2x32xf32>
    %278 = arith.mulf %273, %277 : vector<2x32xf32>
    %c10_92 = arith.constant 10 : index
    %c0_93 = arith.constant 0 : index
    %279 = vector.load %arg12[%c10_92, %c0_93] : memref<16x128xf32, #tpu.memory_space<vmem>>, vector<2x128xf32>
    %cst_94 = arith.constant dense<0.000000e+00> : vector<2x128xf32>
    %280 = tpu.matmul %278, %179, %cst_94 {dimension_numbers = #tpu.dot_dimension_numbers<[1], [0], [0], [1], [0, 0, 1, 1], [], []>} : vector<2x32xf32>, vector<32x128xf32>, vector<2x128xf32> -> vector<2x128xf32>
    %281 = arith.addf %279, %280 : vector<2x128xf32>
    %282 = vector.extract_strided_slice %281 {offsets = [0, 0], sizes = [2, 96], strides = [1, 1]} : vector<2x128xf32> to vector<2x96xf32>
    %283 = arith.negf %282 : vector<2x96xf32>
    %284 = math.exp %283 : vector<2x96xf32>
    %cst_95 = arith.constant 1.000000e+00 : f32
    %285 = vector.broadcast %cst_95 : f32 to vector<2x96xf32>
    %286 = arith.addf %285, %284 : vector<2x96xf32>
    %287 = arith.divf %285, %286 : vector<2x96xf32>
    %288 = vector.extract_strided_slice %281 {offsets = [0, 96], sizes = [2, 32], strides = [1, 1]} : vector<2x128xf32> to vector<2x32xf32>
    %289 = math.tanh %288 : vector<2x32xf32>
    %290 = vector.extract_strided_slice %287 {offsets = [0, 0], sizes = [2, 32], strides = [1, 1]} : vector<2x96xf32> to vector<2x32xf32>
    %291 = vector.extract_strided_slice %287 {offsets = [0, 32], sizes = [2, 32], strides = [1, 1]} : vector<2x96xf32> to vector<2x32xf32>
    %292 = vector.extract_strided_slice %287 {offsets = [0, 64], sizes = [2, 32], strides = [1, 1]} : vector<2x96xf32> to vector<2x32xf32>
    %293 = arith.mulf %291, %276 : vector<2x32xf32>
    %294 = arith.mulf %290, %289 : vector<2x32xf32>
    %295 = arith.addf %293, %294 : vector<2x32xf32>
    %296 = math.tanh %295 : vector<2x32xf32>
    %297 = arith.mulf %292, %296 : vector<2x32xf32>
    %c12_96 = arith.constant 12 : index
    %c0_97 = arith.constant 0 : index
    %298 = vector.load %arg12[%c12_96, %c0_97] : memref<16x128xf32, #tpu.memory_space<vmem>>, vector<2x128xf32>
    %cst_98 = arith.constant dense<0.000000e+00> : vector<2x128xf32>
    %299 = tpu.matmul %297, %179, %cst_98 {dimension_numbers = #tpu.dot_dimension_numbers<[1], [0], [0], [1], [0, 0, 1, 1], [], []>} : vector<2x32xf32>, vector<32x128xf32>, vector<2x128xf32> -> vector<2x128xf32>
    %300 = arith.addf %298, %299 : vector<2x128xf32>
    %301 = vector.extract_strided_slice %300 {offsets = [0, 0], sizes = [2, 96], strides = [1, 1]} : vector<2x128xf32> to vector<2x96xf32>
    %302 = arith.negf %301 : vector<2x96xf32>
    %303 = math.exp %302 : vector<2x96xf32>
    %cst_99 = arith.constant 1.000000e+00 : f32
    %304 = vector.broadcast %cst_99 : f32 to vector<2x96xf32>
    %305 = arith.addf %304, %303 : vector<2x96xf32>
    %306 = arith.divf %304, %305 : vector<2x96xf32>
    %307 = vector.extract_strided_slice %300 {offsets = [0, 96], sizes = [2, 32], strides = [1, 1]} : vector<2x128xf32> to vector<2x32xf32>
    %308 = math.tanh %307 : vector<2x32xf32>
    %309 = vector.extract_strided_slice %306 {offsets = [0, 0], sizes = [2, 32], strides = [1, 1]} : vector<2x96xf32> to vector<2x32xf32>
    %310 = vector.extract_strided_slice %306 {offsets = [0, 32], sizes = [2, 32], strides = [1, 1]} : vector<2x96xf32> to vector<2x32xf32>
    %311 = vector.extract_strided_slice %306 {offsets = [0, 64], sizes = [2, 32], strides = [1, 1]} : vector<2x96xf32> to vector<2x32xf32>
    %312 = arith.mulf %310, %295 : vector<2x32xf32>
    %313 = arith.mulf %309, %308 : vector<2x32xf32>
    %314 = arith.addf %312, %313 : vector<2x32xf32>
    %315 = math.tanh %314 : vector<2x32xf32>
    %316 = arith.mulf %311, %315 : vector<2x32xf32>
    %c14_100 = arith.constant 14 : index
    %c0_101 = arith.constant 0 : index
    %317 = vector.load %arg12[%c14_100, %c0_101] : memref<16x128xf32, #tpu.memory_space<vmem>>, vector<2x128xf32>
    %cst_102 = arith.constant dense<0.000000e+00> : vector<2x128xf32>
    %318 = tpu.matmul %316, %179, %cst_102 {dimension_numbers = #tpu.dot_dimension_numbers<[1], [0], [0], [1], [0, 0, 1, 1], [], []>} : vector<2x32xf32>, vector<32x128xf32>, vector<2x128xf32> -> vector<2x128xf32>
    %319 = arith.addf %317, %318 : vector<2x128xf32>
    %320 = vector.extract_strided_slice %319 {offsets = [0, 0], sizes = [2, 96], strides = [1, 1]} : vector<2x128xf32> to vector<2x96xf32>
    %321 = arith.negf %320 : vector<2x96xf32>
    %322 = math.exp %321 : vector<2x96xf32>
    %cst_103 = arith.constant 1.000000e+00 : f32
    %323 = vector.broadcast %cst_103 : f32 to vector<2x96xf32>
    %324 = arith.addf %323, %322 : vector<2x96xf32>
    %325 = arith.divf %323, %324 : vector<2x96xf32>
    %326 = vector.extract_strided_slice %319 {offsets = [0, 96], sizes = [2, 32], strides = [1, 1]} : vector<2x128xf32> to vector<2x32xf32>
    %327 = math.tanh %326 : vector<2x32xf32>
    %328 = vector.extract_strided_slice %325 {offsets = [0, 0], sizes = [2, 32], strides = [1, 1]} : vector<2x96xf32> to vector<2x32xf32>
    %329 = vector.extract_strided_slice %325 {offsets = [0, 32], sizes = [2, 32], strides = [1, 1]} : vector<2x96xf32> to vector<2x32xf32>
    %330 = vector.extract_strided_slice %325 {offsets = [0, 64], sizes = [2, 32], strides = [1, 1]} : vector<2x96xf32> to vector<2x32xf32>
    %331 = arith.mulf %329, %314 : vector<2x32xf32>
    %332 = arith.mulf %328, %327 : vector<2x32xf32>
    %333 = arith.addf %331, %332 : vector<2x32xf32>
    %334 = math.tanh %333 : vector<2x32xf32>
    %335 = arith.mulf %330, %334 : vector<2x32xf32>
    %c0_104 = arith.constant 0 : index
    %c0_105 = arith.constant 0 : index
    %336 = vector.load %arg9[%c0_104, %c0_105] : memref<32x4xf32, #tpu.memory_space<vmem>>, vector<32x4xf32>
    %cst_106 = arith.constant dense<0.000000e+00> : vector<2x4xf32>
    %337 = tpu.matmul %335, %336, %cst_106 {dimension_numbers = #tpu.dot_dimension_numbers<[1], [0], [0], [1], [0, 0, 1, 1], [], []>} : vector<2x32xf32>, vector<32x4xf32>, vector<2x4xf32> -> vector<2x4xf32>
    %c0_107 = arith.constant 0 : index
    %c0_108 = arith.constant 0 : index
    %338 = vector.load %arg10[%c0_107, %c0_108] : memref<1x4xf32, #tpu.memory_space<vmem>>, vector<1x4xf32>
    %339 = vector.broadcast %338 : vector<1x4xf32> to vector<2x4xf32>
    %340 = arith.addf %337, %339 : vector<2x4xf32>
    %cst_109 = arith.constant 0.000000e+00 : f32
    %341 = vector.broadcast %cst_109 : f32 to vector<2x4xf32>
    %342 = arith.maximumf %340, %341 : vector<2x4xf32>
    %c0_110 = arith.constant 0 : index
    %c0_111 = arith.constant 0 : index
    %343 = vector.load %arg11[%c0_110, %c0_111] : memref<2x4xf32, #tpu.memory_space<vmem>>, vector<2x4xf32>
    tpu.vector_store %arg11[%c0_110, %c0_111], %342 {strides = array<i32>} : memref<2x4xf32, #tpu.memory_space<vmem>>, vector<2x4xf32>,
    return
  }
}

</mosaic_0001>

<bundles_post_ra>
// kernel: lstm_model_forward.1
= control target key start
LH: loop header
LB: loop body
LE: loop exit
PB: predicated region body
PF: predicated region fallthrough
CT: control target
= control target key end

     0   :  { %16 = vsyncpa [#allocation5], 0  ;;  %s3200_s0 = inlined_call_operand.vmem [shape: f32[16,4], index: 0, kind: input, shape index: {}]   ;;  %s3201_s1 = inlined_call_operand.hbm [shape: f32[2,2,32], index: 1, kind: input, shape index: {}]   ;;  %s3202_s2 = inlined_call_operand.hbm [shape: f32[2,2,32], index: 2, kind: input, shape index: {}]   ;;  %s3203_s3 = inlined_call_operand.hbm [shape: f32[4,128], index: 3, kind: input, shape index: {}]   ;;  %s3204_s4 = inlined_call_operand.vmem [shape: f32[32,128], index: 4, kind: input, shape index: {}]   ;;  %s3205_s5 = inlined_call_operand.vmem [shape: f32[1,128], index: 5, kind: input, shape index: {}]   ;;  %s3206_s6 = inlined_call_operand.vmem [shape: f32[32,128], index: 6, kind: input, shape index: {}]   ;;  %s3207_s7 = inlined_call_operand.vmem [shape: f32[32,128], index: 7, kind: input, shape index: {}]   ;;  %s3208_s8 = inlined_call_operand.hbm [shape: f32[1,128], index: 8, kind: input, shape index: {}]   ;;  %s3209_s9 = inlined_call_operand.vmem [shape: f32[32,4], index: 9, kind: input, shape index: {}]   ;;  %s3210_s10 = inlined_call_operand.hbm [shape: f32[1,4], index: 10, kind: input, shape index: {}]   ;;  %s3211_s11 = inlined_call_operand.hbm [shape: f32[2,4], index: 11, kind: output, shape index: {}]  }
   0x1   :  { %17 = vsyncpa [#allocation8], 0 }
   0x2   :  { %18 = vsyncpa [#allocation11], 0 }
   0x3   :  { %19 = vsyncpa [#allocation6], 0  ;;  %s2784_s17 = smov [#allocation7]   ;;  %s2785_s19 = smov [#allocation10]  }
   0x4   :  { %s39_s18 = sshll.u32 %s2784_s17, 4  ;;  %s70_s20 = sshll.u32 %s2785_s19, 4  ;;  %s40_s18 = int_to_ptr.vmem [resolvable:$true] %s39_s18  ;;  %s2856_s20 = int_to_ptr.vmem [resolvable:$true] %s70_s20 }
   0x5   :  { %s2644_s23 = scalar_lea.hbm %s3202_s2, 64 }
   0x6   :  { %p2645_p0 = scmp.ne.s32.totalorder %s3202_s2, %s2644_s23  ;;  %p2648_p1 = scmp.lt.u32.totalorder %s2644_s23, %s3202_s2 }
   0x8   :  { %p2650_p2 = pnand %p2648_p1, %p2645_p0 }
   0xa   :  { %2653 = shalt.err (!%p2650_p2)
}
   0xb   :  { %s2654_s28 = scalar_lea.vmem %s40_s18, 64  ;;  %p2659_p4 = scmp.lt.s32.totalorder %s40_s18, %s40_s18 }
   0xc   :  { %p2655_p3 = scmp.ne.s32.totalorder %s40_s18, %s2654_s28  ;;  %p2660_p5 = scmp.lt.s32.totalorder %s2654_s28, %s2654_s28 }
   0xe   :  { %p2661_p6 = por %p2660_p5, %p2659_p4 }
  0x10   :  { %p2662_p7 = pnand %p2661_p6, %p2655_p3 }
  0x12   :  { %2665 = shalt.err (!%p2662_p7)
}
  0x13   :  { %s2786_s29 = smov 32   ;;  %s2787_s30 = smov 2  }
  0x14   :  { %45 = dma.hbm_to_vmem [thread:$0]  %s3202_s2, 64, %s40_s18, [#allocation8], %s2786_s29, %s2786_s29, %s2787_s30  }
  0x15   :  { %s2666_s16 = scalar_lea.hbm %s3208_s8, 16 }
  0x16   :  { %p2667_p8 = scmp.ne.s32.totalorder %s3208_s8, %s2666_s16  ;;  %p2670_p9 = scmp.lt.u32.totalorder %s2666_s16, %s3208_s8 }
  0x18   :  { %p2672_p10 = pnand %p2670_p9, %p2667_p8 }
  0x1a   :  { %2675 = shalt.err (!%p2672_p10)
}
  0x1b   :  { %s2676_s23 = scalar_lea.vmem %s2856_s20, 16  ;;  %s2680_s2 = scalar_lea.vmem %s2856_s20, 32 }
  0x1c   :  { %p2677_p11 = scmp.ne.s32.totalorder %s2856_s20, %s2676_s23  ;;  %p2681_p12 = scmp.lt.s32.totalorder %s2856_s20, %s2856_s20 }
  0x1d   :  { %p2682_p13 = scmp.lt.s32.totalorder %s2680_s2, %s2676_s23 }
  0x1f   :  { %p2683_p0 = por %p2682_p13, %p2681_p12 }
  0x21   :  { %p2684_p1 = pnand %p2683_p0, %p2677_p11 }
  0x23   :  { %2687 = shalt.err (!%p2684_p1)
}
  0x24   :  { %73 = dma.hbm_to_vmem [thread:$0]  %s3208_s8, 16, %s2856_s20, [#allocation11]  }
  0x25   :  { %s2788_s25 = smov [#allocation4]   ;;  %s2789_s27 = smov [#allocation9]  }
  0x26   :  { %s27_s26 = sshll.u32 %s2788_s25, 4  ;;  %s52_s28 = sshll.u32 %s2789_s27, 4  ;;  %s28_s26 = int_to_ptr.vmem [resolvable:$true] %s27_s26  ;;  %s53_s28 = int_to_ptr.vmem [resolvable:$true] %s52_s28 }
  0x27   :  { %s2688_s14 = scalar_lea.hbm %s3201_s1, 64 }
  0x28   :  { %p2689_p2 = scmp.ne.s32.totalorder %s3201_s1, %s2688_s14  ;;  %p2692_p3 = scmp.lt.u32.totalorder %s2688_s14, %s3201_s1 }
  0x2a   :  { %p2694_p4 = pnand %p2692_p3, %p2689_p2 }
  0x2c   :  { %2697 = shalt.err (!%p2694_p4)
}
  0x2d   :  { %s2698_s8 = scalar_lea.vmem %s28_s26, 64  ;;  %p2703_p6 = scmp.lt.s32.totalorder %s28_s26, %s28_s26 }
  0x2e   :  { %p2699_p5 = scmp.ne.s32.totalorder %s28_s26, %s2698_s8  ;;  %p2704_p7 = scmp.lt.s32.totalorder %s2698_s8, %s2698_s8 }
  0x30   :  { %p2705_p8 = por %p2704_p7, %p2703_p6 }
  0x32   :  { %p2706_p9 = pnand %p2705_p8, %p2699_p5 }
  0x34   :  { %2709 = shalt.err (!%p2706_p9)
}
  0x35   :  { %33 = dma.hbm_to_vmem [thread:$0]  %s3201_s1, 64, %s28_s26, [#allocation5], %s2786_s29, %s2786_s29, %s2787_s30  }
  0x36   :  { %s2710_s2 = scalar_lea.hbm %s3203_s3, 64 }
  0x37   :  { %p2711_p10 = scmp.ne.s32.totalorder %s3203_s3, %s2710_s2  ;;  %p2714_p11 = scmp.lt.u32.totalorder %s2710_s2, %s3203_s3 }
  0x39   :  { %p2716_p12 = pnand %p2714_p11, %p2711_p10 }
  0x3b   :  { %2719 = shalt.err (!%p2716_p12)
}
  0x3c   :  { %s2720_s12 = scalar_lea.vmem %s53_s28, 64  ;;  %p2725_p0 = scmp.lt.s32.totalorder %s53_s28, %s53_s28 }
  0x3d   :  { %p2721_p13 = scmp.ne.s32.totalorder %s53_s28, %s2720_s12  ;;  %p2726_p1 = scmp.lt.s32.totalorder %s2720_s12, %s2720_s12 }
  0x3f   :  { %p2727_p2 = por %p2726_p1, %p2725_p0 }
  0x41   :  { %p2728_p3 = pnand %p2727_p2, %p2721_p13 }
  0x43   :  { %2731 = shalt.err (!%p2728_p3)
}
  0x44   :  { %55 = dma.hbm_to_vmem [thread:$0]  %s3203_s3, 64, %s53_s28, [#allocation8]  }
  0x45   :  { %s2790_s26 = smov [#allocation12]   ;;  %s2732_s16 = scalar_lea.hbm %s3210_s10, 16 }
  0x46   :  { %s82_s13 = sshll.u32 %s2790_s26, 4  ;;  %p2733_p4 = scmp.ne.s32.totalorder %s3210_s10, %s2732_s16  ;;  %s83_s13 = int_to_ptr.vmem [resolvable:$true] %s82_s13 }
  0x47   :  { %p2736_p5 = scmp.lt.u32.totalorder %s2732_s16, %s3210_s10 }
  0x49   :  { %p2738_p6 = pnand %p2736_p5, %p2733_p4 }
  0x4b   :  { %2741 = shalt.err (!%p2738_p6)
}
  0x4c   :  { %s2742_s21 = scalar_lea.vmem %s83_s13, 16  ;;  %s2746_s3 = scalar_lea.vmem %s83_s13, 32 }
  0x4d   :  { %p2743_p7 = scmp.ne.s32.totalorder %s83_s13, %s2742_s21  ;;  %p2747_p8 = scmp.lt.s32.totalorder %s83_s13, %s83_s13 }
  0x4e   :  { %p2748_p9 = scmp.lt.s32.totalorder %s2746_s3, %s2742_s21 }
  0x50   :  { %p2749_p10 = por %p2748_p9, %p2747_p8 }
  0x52   :  { %p2750_p11 = pnand %p2749_p10, %p2743_p7 }
  0x54   :  { %2753 = shalt.err (!%p2750_p11)
}
  0x55   :  { %85 = dma.hbm_to_vmem [thread:$0]  %s3210_s10, 16, %s83_s13, [#allocation11]  }
  0x56   :  { %2776 = dma.done.wait [#allocation5], 64  }
  0x57   :  { %2777 = vsyncadd [#allocation5], 4294967232 }
  0x58   :  { %2778 = dma.done.wait [#allocation8], 128  }
  0x59   :  { %2779 = vsyncadd [#allocation8], 4294967168 }
  0x5a   :  { %2780 = dma.done.wait [#allocation11], 32  }
  0x5b   :  { %2781 = vsyncadd [#allocation11], 4294967264  ;;  %v2791_v0 = vmov 0.0|0.0   ;;  %vm2792_vm0 = vmmov 0   ;;  %v2793_v1 = vmov 0.0   ;;  %vm118_vm1 = vcmask 1043456  }
  0x5c   :  { %2394 = vmatprep.subr.bf16.mxu1 %v2791_v0  ;;  %2204 = vmatprep.mubr.msk.f32.mxu1 %vm2792_vm0, %v2793_v1  ;;  %vm111_vm2 = vcmask 31744   ;;  %v103_v2 = vld [vmem:[#allocation9] sm:$0xf]  ;;  %v101_v3 = vld [vmem:[%s3200_s0] sm:$0xff]  ;;  %v201_v7 = vld [vmem:[%s3204_s4 + $0x10] sm:$0xff]  ;;  %vm206_vm3 = vcmask 261120  }
  0x5d   :  { %v102_v4 = vld [vmem:[%s3200_s0 + $0x8] sm:$0xff]  ;;  %2191 = vmatprep.subr.msk.mxu0 %vm118_vm1, %v103_v2  ;;  %2193 = vmatprep.mubr.msk.f32.mxu0 %vm111_vm2, %v101_v3  ;;  %v199_v5 = vld [vmem:[%s3204_s4] sm:$0xff]  ;;  %v202_v9 = vld [vmem:[%s3204_s4 + $0x18] sm:$0xff]  ;;  %vm313_vm4 = vcmask 254976   ;;  %s2795_s13 = smov [#allocation13]   ;;  %vm2037_vm5 = vcmask 25600  }
  0x5e   :  { %v200_v6 = vld [vmem:[%s3204_s4 + $0x8] sm:$0xff]  ;;  %2192 = vmatpush3.msk.msra.mxu0 %vm118_vm1, %v103_v2  ;;  %v2955_v10 = vpack.c.bf16 %v202_v9, %v201_v7  ;;  %v203_v11 = vld [vmem:[#allocation4] sm:$0x3]  ;;  %v204_v22 = vld [vmem:[#allocation7] sm:$0x3]  ;;  %s2045_s0 = sshll.u32 %s2795_s13, 4  ;;  %s2046_s0 = int_to_ptr.vmem [resolvable:$true] %s2045_s0 }
  0x5f   :  { %v2948_v8 = vpack.c.bf16 %v200_v6, %v199_v5  ;;  %2194 = vmatmul.mubr.msk.f32.vlgmr.msra.gmra.mrb[0].mxu0 %vm111_vm2, %v102_v4  ;;  %2400 = vmatprep.subr.bf16.mxu0 %v2791_v0  ;;  %v2056_v12 = vld [vmem:[%s3205_s5] ss:$0 sm:$0xff]  ;;  %s2794_s5 = smov 64   ;;  %p2759_p13 = scmp.lt.s32.totalorder %s2046_s0, %s2046_s0 }
  0x60   :  { %2215 = vmatprep.mubr.msk.f32.mxu0 %vm2792_vm0, %v2793_v1 }
  0x61   :  { %2396 = vmatpush3.bf16.msra.mxu1 %v2948_v8  ;;  %2402 = vmatpush3.bf16.msra.mxu0 %v2948_v8 }
  0x62   :  { %2397 = vmatprep.subr.bf16.mxu1 %v2791_v0  ;;  %2403 = vmatprep.subr.bf16.mxu0 %v2791_v0 }
  0x65   :  { %2399 = vmatpush3.bf16.msra.mxu1 %v2955_v10  ;;  %2405 = vmatpush3.bf16.msra.mxu0 %v2955_v10 }
  0x66   :  { %2406 = vmatprep.subr.bf16.mxu1 %v2791_v0  ;;  %2412 = vmatprep.subr.bf16.mxu0 %v2791_v0 }
  0x68   :  { %2205 = vmatmul.mubr.msk.f32.vlgmr.msra.gmra.mrb[0].mxu1 %vm206_vm3, %v203_v11 }
  0x69   :  { %2408 = vmatpush3.bf16.msra.mxu1 %v2948_v8  ;;  %2226 = vmatprep.mubr.msk.f32.mxu1 %vm2792_vm0, %v2793_v1 }
  0x6a   :  { %2409 = vmatprep.subr.bf16.mxu1 %v2791_v0 }
  0x6d   :  { %2411 = vmatpush3.bf16.msra.mxu1 %v2955_v10 }
  0x6e   :  { %2418 = vmatprep.subr.bf16.mxu1 %v2791_v0 }
 0x132   :  { %v2195_v13 = vpop.f32.mrb[0].mxu0 }
 0x133   :  { %v194_v14 = vadd.f32 %v2195_v13, %v2056_v12  ;;  %v188_v15 = vpop.f32.mrb[1].mxu0 }
 0x134   :  { %v189_v16 = vadd.f32 %v2056_v12, %v188_v15 }
 0x135   :  { %198 = vst [vmem:[#allocation2 + $0x8] sm:$0xff] %v194_v14 }
 0x136   :  { %197 = vst [vmem:[#allocation2] sm:$0xff] %v189_v16 }
 0x13b   :  { %v276_v17 = vpop.f32.mrb[0].mxu1 }
 0x13c   :  { %v2206_v18 = vpop.f32.mrb[1].mxu1 }
 0x13d   :  { %v205_v19 = vld [vmem:[#allocation2] sm:$0x3]  ;;  %v315_v37 = vld [vmem:[#allocation2 + $0x2] sm:$0x3]  ;;  %v418_v55 = vld [vmem:[#allocation2 + $0x4] sm:$0x3] }
 0x13e   :  { %v280_v20 = vadd.f32 %v276_v17, %v205_v19  ;;  %v521_v13 = vld [vmem:[#allocation2 + $0x6] sm:$0x3] }
 0x140   :  { %2516 = vtanh.f32 %v280_v20  ;;  %v2061_v23 = vmul.f32 -1.442695, %v280_v20 }
 0x142   :  { %2518 = vpow2.f32 %v2061_v23 }
 0x14a   :  { %v2517_v21 = vpop.eup %2516 }
 0x14b   :  { %294 = vrot.lane.b32.xlu0 %v2517_v21, %s2786_s29 }
 0x14c   :  { %v2519_v24 = vpop.eup %2518 }
 0x14d   :  { %v284_v25 = vadd.f32 1.0, %v2519_v24 }
 0x14f   :  { %289 = vrot.lane.b32.xlu0 %v204_v22, %s2786_s29  ;;  %2520 = vrcp.f32 %v284_v25 }
 0x159   :  { %v2521_v26 = vpop.eup %2520 }
 0x1bd   :  { %v295_v27 = vpop.permute.xlu0 %294 }
 0x1be   :  { %v297_v28 = vmul.f32 %v2521_v26, %v295_v27 }
 0x1c0   :  { %299 = vrot.lane.b32.xlu1 %v297_v28, %s2786_s29 }
 0x1c1   :  { %v290_v29 = vpop.permute.xlu0 %289 }
 0x1c2   :  { %v292_v30 = vmul.f32 %v2521_v26, %v290_v29 }
 0x232   :  { %v300_v31 = vpop.permute.xlu1 %299 }
 0x233   :  { %v302_v32 = vadd.f32 %v300_v31, %v292_v30  ;;  %v624_v31 = vld [vmem:[#allocation2 + $0x8] sm:$0x3] }
 0x235   :  { %2522 = vtanh.f32 %v302_v32 }
 0x23f   :  { %v2523_v33 = vpop.eup %2522 }
 0x240   :  { %305 = vrot.lane.b32.xlu1 %v2523_v33, %s2786_s29 }
 0x2b2   :  { %v306_v34 = vpop.permute.xlu1 %305 }
 0x2b3   :  { %v308_v35 = vmul.f32 %v2521_v26, %v306_v34 }
 0x2b5   :  { %310 = vrot.lane.b32.xlu0 %v308_v35, %s2794_s5 }
 0x327   :  { %v311_v36 = vpop.permute.xlu0 %310 }
 0x328   :  { %314 = vst.msk [vmem:[#allocation3] sm:$0x3] %vm313_vm4, %v311_v36  ;;  %2216 = vmatmul.mubr.msk.f32.vlgmr.msra.gmra.mrb[2].mxu0 %vm206_vm3, %v311_v36 }
 0x329   :  { %2414 = vmatpush3.bf16.msra.mxu0 %v2948_v8  ;;  %2237 = vmatprep.mubr.msk.f32.mxu0 %vm2792_vm0, %v2793_v1 }
 0x32a   :  { %2415 = vmatprep.subr.bf16.mxu0 %v2791_v0 }
 0x32d   :  { %2417 = vmatpush3.bf16.msra.mxu0 %v2955_v10 }
 0x32e   :  { %2424 = vmatprep.subr.bf16.mxu0 %v2791_v0 }
 0x3fb   :  { %v384_v38 = vpop.f32.mrb[2].mxu0 }
 0x3fc   :  { %v388_v39 = vadd.f32 %v384_v38, %v315_v37  ;;  %v2217_v40 = vpop.f32.mrb[3].mxu0 }
 0x3fe   :  { %2524 = vtanh.f32 %v388_v39  ;;  %v2063_v42 = vmul.f32 -1.442695, %v388_v39 }
 0x400   :  { %2526 = vpow2.f32 %v2063_v42 }
 0x408   :  { %v2525_v41 = vpop.eup %2524 }
 0x409   :  { %398 = vrot.lane.b32.xlu1 %v2525_v41, %s2786_s29 }
 0x40a   :  { %v2527_v43 = vpop.eup %2526 }
 0x40b   :  { %v392_v44 = vadd.f32 1.0, %v2527_v43 }
 0x40d   :  { %2528 = vrcp.f32 %v392_v44 }
 0x417   :  { %v2529_v45 = vpop.eup %2528 }
 0x418   :  { %v396_v48 = vmul.f32 %v2529_v45, %v302_v32 }
 0x47b   :  { %v399_v46 = vpop.permute.xlu1 %398 }
 0x47c   :  { %v401_v47 = vmul.f32 %v2529_v45, %v399_v46 }
 0x47e   :  { %403 = vrot.lane.b32.xlu0 %v401_v47, %s2786_s29 }
 0x4f0   :  { %v404_v49 = vpop.permute.xlu0 %403 }
 0x4f1   :  { %v406_v50 = vadd.f32 %v404_v49, %v396_v48  ;;  %v727_v49 = vld [vmem:[#allocation2 + $0xa] sm:$0x3] }
 0x4f3   :  { %2530 = vtanh.f32 %v406_v50 }
 0x4fd   :  { %v2531_v51 = vpop.eup %2530 }
 0x4fe   :  { %409 = vrot.lane.b32.xlu1 %v2531_v51, %s2786_s29 }
 0x570   :  { %v410_v52 = vpop.permute.xlu1 %409 }
 0x571   :  { %v412_v53 = vmul.f32 %v2529_v45, %v410_v52 }
 0x573   :  { %414 = vrot.lane.b32.xlu0 %v412_v53, %s2794_s5 }
 0x5e5   :  { %v415_v54 = vpop.permute.xlu0 %414 }
 0x5e6   :  { %417 = vst.msk [vmem:[#allocation3 + $0x2] sm:$0x3] %vm313_vm4, %v415_v54  ;;  %2227 = vmatmul.mubr.msk.f32.vlgmr.msra.gmra.mrb[2].mxu1 %vm206_vm3, %v415_v54 }
 0x5e7   :  { %2420 = vmatpush3.bf16.msra.mxu1 %v2948_v8  ;;  %2248 = vmatprep.mubr.msk.f32.mxu1 %vm2792_vm0, %v2793_v1 }
 0x5e8   :  { %2421 = vmatprep.subr.bf16.mxu1 %v2791_v0 }
 0x5eb   :  { %2423 = vmatpush3.bf16.msra.mxu1 %v2955_v10 }
 0x5ec   :  { %2430 = vmatprep.subr.bf16.mxu1 %v2791_v0 }
 0x6b9   :  { %v487_v56 = vpop.f32.mrb[2].mxu1 }
 0x6ba   :  { %v491_v57 = vadd.f32 %v487_v56, %v418_v55  ;;  %v2228_v58 = vpop.f32.mrb[3].mxu1 }
 0x6bc   :  { %2532 = vtanh.f32 %v491_v57  ;;  %v2065_v60 = vmul.f32 -1.442695, %v491_v57 }
 0x6be   :  { %2534 = vpow2.f32 %v2065_v60 }
 0x6c6   :  { %v2533_v59 = vpop.eup %2532 }
 0x6c7   :  { %501 = vrot.lane.b32.xlu1 %v2533_v59, %s2786_s29 }
 0x6c8   :  { %v2535_v61 = vpop.eup %2534 }
 0x6c9   :  { %v495_v62 = vadd.f32 1.0, %v2535_v61 }
 0x6cb   :  { %2536 = vrcp.f32 %v495_v62 }
 0x6d5   :  { %v2537_v63 = vpop.eup %2536 }
 0x6d6   :  { %v499_v4 = vmul.f32 %v2537_v63, %v406_v50 }
 0x739   :  { %v502_v2 = vpop.permute.xlu1 %501 }
 0x73a   :  { %v504_v3 = vmul.f32 %v2537_v63, %v502_v2 }
 0x73c   :  { %506 = vrot.lane.b32.xlu0 %v504_v3, %s2786_s29 }
 0x7ae   :  { %v507_v5 = vpop.permute.xlu0 %506 }
 0x7af   :  { %v509_v6 = vadd.f32 %v507_v5, %v499_v4  ;;  %v830_v4 = vld [vmem:[#allocation2 + $0xc] sm:$0x3] }
 0x7b1   :  { %2538 = vtanh.f32 %v509_v6 }
 0x7bb   :  { %v2539_v7 = vpop.eup %2538 }
 0x7bc   :  { %512 = vrot.lane.b32.xlu1 %v2539_v7, %s2786_s29 }
 0x82e   :  { %v513_v9 = vpop.permute.xlu1 %512 }
 0x82f   :  { %v515_v11 = vmul.f32 %v2537_v63, %v513_v9 }
 0x831   :  { %517 = vrot.lane.b32.xlu0 %v515_v11, %s2794_s5 }
 0x8a3   :  { %v518_v12 = vpop.permute.xlu0 %517 }
 0x8a4   :  { %520 = vst.msk [vmem:[#allocation3 + $0x4] sm:$0x3] %vm313_vm4, %v518_v12  ;;  %2238 = vmatmul.mubr.msk.f32.vlgmr.msra.gmra.mrb[4].mxu0 %vm206_vm3, %v518_v12 }
 0x8a5   :  { %2426 = vmatpush3.bf16.msra.mxu0 %v2948_v8  ;;  %2259 = vmatprep.mubr.msk.f32.mxu0 %vm2792_vm0, %v2793_v1 }
 0x8a6   :  { %2427 = vmatprep.subr.bf16.mxu0 %v2791_v0 }
 0x8a9   :  { %2429 = vmatpush3.bf16.msra.mxu0 %v2955_v10 }
 0x8aa   :  { %2436 = vmatprep.subr.bf16.mxu0 %v2791_v0 }
 0x977   :  { %v590_v14 = vpop.f32.mrb[4].mxu0 }
 0x978   :  { %v594_v15 = vadd.f32 %v590_v14, %v521_v13  ;;  %v2239_v16 = vpop.f32.mrb[5].mxu0 }
 0x97a   :  { %2540 = vtanh.f32 %v594_v15  ;;  %v2067_v18 = vmul.f32 -1.442695, %v594_v15 }
 0x97c   :  { %2542 = vpow2.f32 %v2067_v18 }
 0x984   :  { %v2541_v17 = vpop.eup %2540 }
 0x985   :  { %604 = vrot.lane.b32.xlu1 %v2541_v17, %s2786_s29 }
 0x986   :  { %v2543_v19 = vpop.eup %2542 }
 0x987   :  { %v598_v20 = vadd.f32 1.0, %v2543_v19 }
 0x989   :  { %2544 = vrcp.f32 %v598_v20 }
 0x993   :  { %v2545_v21 = vpop.eup %2544 }
 0x994   :  { %v602_v24 = vmul.f32 %v2545_v21, %v509_v6 }
 0x9f7   :  { %v605_v22 = vpop.permute.xlu1 %604 }
 0x9f8   :  { %v607_v23 = vmul.f32 %v2545_v21, %v605_v22 }
 0x9fa   :  { %609 = vrot.lane.b32.xlu0 %v607_v23, %s2786_s29 }
 0xa6c   :  { %v610_v25 = vpop.permute.xlu0 %609 }
 0xa6d   :  { %v612_v26 = vadd.f32 %v610_v25, %v602_v24  ;;  %v933_v24 = vld [vmem:[#allocation2 + $0xe] sm:$0x3] }
 0xa6f   :  { %2546 = vtanh.f32 %v612_v26 }
 0xa79   :  { %v2547_v27 = vpop.eup %2546 }
 0xa7a   :  { %615 = vrot.lane.b32.xlu1 %v2547_v27, %s2786_s29 }
 0xaec   :  { %v616_v28 = vpop.permute.xlu1 %615 }
 0xaed   :  { %v618_v29 = vmul.f32 %v2545_v21, %v616_v28 }
 0xaef   :  { %620 = vrot.lane.b32.xlu0 %v618_v29, %s2794_s5 }
 0xb61   :  { %v621_v30 = vpop.permute.xlu0 %620 }
 0xb62   :  { %623 = vst.msk [vmem:[#allocation3 + $0x6] sm:$0x3] %vm313_vm4, %v621_v30  ;;  %2249 = vmatmul.mubr.msk.f32.vlgmr.msra.gmra.mrb[4].mxu1 %vm206_vm3, %v621_v30 }
 0xb63   :  { %2432 = vmatpush3.bf16.msra.mxu1 %v2948_v8  ;;  %2270 = vmatprep.mubr.msk.f32.mxu1 %vm2792_vm0, %v2793_v1 }
 0xb64   :  { %2433 = vmatprep.subr.bf16.mxu1 %v2791_v0 }
 0xb67   :  { %2435 = vmatpush3.bf16.msra.mxu1 %v2955_v10 }
 0xb69   :  { %v1036_v3 = vld [vmem:[#allocation3] sm:$0xff] }
 0xc35   :  { %v693_v32 = vpop.f32.mrb[4].mxu1 }
 0xc36   :  { %v697_v33 = vadd.f32 %v693_v32, %v624_v31  ;;  %v2250_v34 = vpop.f32.mrb[5].mxu1 }
 0xc38   :  { %2548 = vtanh.f32 %v697_v33  ;;  %v2069_v36 = vmul.f32 -1.442695, %v697_v33 }
 0xc3a   :  { %2550 = vpow2.f32 %v2069_v36 }
 0xc42   :  { %v2549_v35 = vpop.eup %2548 }
 0xc43   :  { %707 = vrot.lane.b32.xlu1 %v2549_v35, %s2786_s29 }
 0xc44   :  { %v2551_v37 = vpop.eup %2550 }
 0xc45   :  { %v701_v38 = vadd.f32 1.0, %v2551_v37 }
 0xc47   :  { %2552 = vrcp.f32 %v701_v38 }
 0xc51   :  { %v2553_v39 = vpop.eup %2552 }
 0xc52   :  { %v705_v42 = vmul.f32 %v2553_v39, %v612_v26 }
 0xcb5   :  { %v708_v40 = vpop.permute.xlu1 %707 }
 0xcb6   :  { %v710_v41 = vmul.f32 %v2553_v39, %v708_v40  ;;  %v1039_v40 = vld [vmem:[%s3206_s6 + $0x8] sm:$0xff] }
 0xcb8   :  { %712 = vrot.lane.b32.xlu0 %v710_v41, %s2786_s29 }
 0xd2a   :  { %v713_v43 = vpop.permute.xlu0 %712 }
 0xd2b   :  { %v715_v44 = vadd.f32 %v713_v43, %v705_v42  ;;  %v1040_v42 = vld [vmem:[%s3206_s6 + $0x10] sm:$0xff]  ;;  %v1041_v43 = vld [vmem:[%s3206_s6 + $0x18] sm:$0xff] }
 0xd2d   :  { %2554 = vtanh.f32 %v715_v44 }
 0xd37   :  { %v2555_v45 = vpop.eup %2554 }
 0xd38   :  { %718 = vrot.lane.b32.xlu1 %v2555_v45, %s2786_s29  ;;  %v1132_v45 = vld [vmem:[%s3207_s7] sm:$0xff] }
 0xdaa   :  { %v719_v46 = vpop.permute.xlu1 %718 }
 0xdab   :  { %v721_v47 = vmul.f32 %v2553_v39, %v719_v46  ;;  %v1038_v39 = vld [vmem:[%s3206_s6] sm:$0xff]  ;;  %v1133_v46 = vld [vmem:[%s3207_s7 + $0x8] sm:$0xff] }
 0xdac   :  { %v2442_v41 = vpack.c.bf16 %v1039_v40, %v1038_v39 }
 0xdad   :  { %723 = vrot.lane.b32.xlu0 %v721_v47, %s2794_s5  ;;  %v1134_v47 = vld [vmem:[%s3207_s7 + $0x10] sm:$0xff] }
 0xdae   :  { %2443 = vmatprep.subr.bf16.mxu1 %v2442_v41 }
 0xe1f   :  { %v724_v48 = vpop.permute.xlu0 %723 }
 0xe20   :  { %726 = vst.msk [vmem:[#allocation3 + $0x8] sm:$0x3] %vm313_vm4, %v724_v48  ;;  %2260 = vmatmul.mubr.msk.f32.vlgmr.msra.gmra.mrb[6].mxu0 %vm206_vm3, %v724_v48  ;;  %v3076_v48 = vpack.c.bf16 %v1133_v46, %v1132_v45 }
 0xe21   :  { %2438 = vmatpush3.bf16.msra.mxu0 %v2948_v8  ;;  %2281 = vmatprep.mubr.msk.f32.mxu0 %vm2792_vm0, %v2793_v1 }
 0xe22   :  { %2439 = vmatprep.subr.bf16.mxu0 %v2791_v0 }
 0xe25   :  { %2441 = vmatpush3.bf16.msra.mxu0 %v2955_v10 }
 0xe26   :  { %2450 = vmatprep.subr.bf16.mxu0 %v2791_v0 }
 0xef3   :  { %v796_v50 = vpop.f32.mrb[6].mxu0 }
 0xef4   :  { %v800_v51 = vadd.f32 %v796_v50, %v727_v49  ;;  %v2261_v52 = vpop.f32.mrb[7].mxu0  ;;  %v1135_v49 = vld [vmem:[%s3207_s7 + $0x18] sm:$0xff] }
 0xef5   :  { %v3082_v52 = vpack.c.bf16 %v1135_v49, %v1134_v47 }
 0xef6   :  { %2556 = vtanh.f32 %v800_v51  ;;  %v2071_v54 = vmul.f32 -1.442695, %v800_v51 }
 0xef8   :  { %2558 = vpow2.f32 %v2071_v54  ;;  %v1137_v54 = vld [vmem:[#allocation4 + $0x2] sm:$0x3] }
 0xf00   :  { %v2557_v53 = vpop.eup %2556 }
 0xf01   :  { %810 = vrot.lane.b32.xlu1 %v2557_v53, %s2786_s29  ;;  %v1139_v53 = vld [vmem:[#allocation7 + $0x2] sm:$0x3] }
 0xf02   :  { %v2559_v8 = vpop.eup %2558 }
 0xf03   :  { %v804_v55 = vadd.f32 1.0, %v2559_v8 }
 0xf05   :  { %2560 = vrcp.f32 %v804_v55 }
 0xf0f   :  { %v2561_v56 = vpop.eup %2560 }
 0xf10   :  { %v808_v10 = vmul.f32 %v2561_v56, %v715_v44  ;;  %v2446_v44 = vpack.c.bf16 %v1041_v43, %v1040_v42 }
 0xf73   :  { %v811_v57 = vpop.permute.xlu1 %810 }
 0xf74   :  { %v813_v58 = vmul.f32 %v2561_v56, %v811_v57 }
 0xf76   :  { %815 = vrot.lane.b32.xlu0 %v813_v58, %s2786_s29  ;;  %v2076_v58 = vld [vmem:[#allocation10] ss:$0 sm:$0xff] }
 0xfe8   :  { %v816_v59 = vpop.permute.xlu0 %815 }
 0xfe9   :  { %v818_v60 = vadd.f32 %v816_v59, %v808_v10 }
 0xfeb   :  { %2562 = vtanh.f32 %v818_v60 }
 0xff5   :  { %v2563_v61 = vpop.eup %2562 }
 0xff6   :  { %821 = vrot.lane.b32.xlu1 %v2563_v61, %s2786_s29 }
0x1068   :  { %v822_v62 = vpop.permute.xlu1 %821 }
0x1069   :  { %v824_v63 = vmul.f32 %v2561_v56, %v822_v62 }
0x106b   :  { %826 = vrot.lane.b32.xlu0 %v824_v63, %s2794_s5 }
0x10dd   :  { %v827_v2 = vpop.permute.xlu0 %826 }
0x10de   :  { %829 = vst.msk [vmem:[#allocation3 + $0xa] sm:$0x3] %vm313_vm4, %v827_v2  ;;  %2271 = vmatmul.mubr.msk.f32.vlgmr.msra.gmra.mrb[6].mxu1 %vm206_vm3, %v827_v2 }
0x10df   :  { %2292 = vmatprep.mubr.msk.f32.mxu1 %vm206_vm3, %v1036_v3  ;;  %2445 = vmatpush3.bf16.msra.mxu1 %v2442_v41 }
0x10e0   :  { %2447 = vmatprep.subr.bf16.mxu1 %v2446_v44 }
0x10e3   :  { %2449 = vmatpush3.bf16.msra.mxu1 %v2446_v44 }
0x10e4   :  { %2456 = vmatprep.subr.bf16.mxu1 %v2791_v0 }
0x11b1   :  { %v899_v5 = vpop.f32.mrb[6].mxu1 }
0x11b2   :  { %v903_v6 = vadd.f32 %v899_v5, %v830_v4  ;;  %v2272_v7 = vpop.f32.mrb[7].mxu1 }
0x11b4   :  { %2564 = vtanh.f32 %v903_v6  ;;  %v2073_v11 = vmul.f32 -1.442695, %v903_v6 }
0x11b6   :  { %2566 = vpow2.f32 %v2073_v11 }
0x11be   :  { %v2565_v9 = vpop.eup %2564 }
0x11bf   :  { %913 = vrot.lane.b32.xlu1 %v2565_v9, %s2786_s29 }
0x11c0   :  { %v2567_v12 = vpop.eup %2566 }
0x11c1   :  { %v907_v13 = vadd.f32 1.0, %v2567_v12 }
0x11c3   :  { %2568 = vrcp.f32 %v907_v13 }
0x11cd   :  { %v2569_v14 = vpop.eup %2568 }
0x11ce   :  { %v911_v17 = vmul.f32 %v2569_v14, %v818_v60 }
0x1231   :  { %v914_v15 = vpop.permute.xlu1 %913 }
0x1232   :  { %v916_v16 = vmul.f32 %v2569_v14, %v914_v15 }
0x1234   :  { %918 = vrot.lane.b32.xlu0 %v916_v16, %s2786_s29 }
0x12a6   :  { %v919_v18 = vpop.permute.xlu0 %918 }
0x12a7   :  { %v921_v19 = vadd.f32 %v919_v18, %v911_v17 }
0x12a9   :  { %2570 = vtanh.f32 %v921_v19 }
0x12b3   :  { %v2571_v20 = vpop.eup %2570 }
0x12b4   :  { %924 = vrot.lane.b32.xlu1 %v2571_v20, %s2786_s29 }
0x1326   :  { %v925_v21 = vpop.permute.xlu1 %924 }
0x1327   :  { %v927_v22 = vmul.f32 %v2569_v14, %v925_v21 }
0x1329   :  { %929 = vrot.lane.b32.xlu0 %v927_v22, %s2794_s5 }
0x139b   :  { %v930_v23 = vpop.permute.xlu0 %929 }
0x139c   :  { %932 = vst.msk [vmem:[#allocation3 + $0xc] sm:$0x3] %vm313_vm4, %v930_v23  ;;  %2282 = vmatmul.mubr.msk.f32.vlgmr.msra.gmra.mrb[8].mxu0 %vm206_vm3, %v930_v23 }
0x139d   :  { %2303 = vmatprep.mubr.msk.f32.mxu0 %vm2792_vm0, %v2793_v1  ;;  %2452 = vmatpush3.bf16.msra.mxu0 %v3076_v48 }
0x139e   :  { %2453 = vmatprep.subr.bf16.mxu0 %v2791_v0 }
0x13a1   :  { %2455 = vmatpush3.bf16.msra.mxu0 %v3082_v52 }
0x13a2   :  { %2462 = vmatprep.subr.bf16.mxu0 %v2791_v0 }
0x13a4   :  { %2304 = vmatmul.mubr.msk.f32.vlgmr.msra.gmra.mrb[10].mxu0 %vm206_vm3, %v1137_v54 }
0x13a5   :  { %2464 = vmatpush3.bf16.msra.mxu0 %v3076_v48  ;;  %2325 = vmatprep.mubr.msk.f32.mxu0 %vm2792_vm0, %v2793_v1 }
0x13a6   :  { %2465 = vmatprep.subr.bf16.mxu0 %v2791_v0 }
0x13a9   :  { %2467 = vmatpush3.bf16.msra.mxu0 %v3082_v52 }
0x13aa   :  { %2474 = vmatprep.subr.bf16.mxu0 %v2791_v0 }
0x146f   :  { %v1002_v25 = vpop.f32.mrb[8].mxu0 }
0x1470   :  { %v1006_v26 = vadd.f32 %v1002_v25, %v933_v24  ;;  %v2283_v27 = vpop.f32.mrb[9].mxu0 }
0x1472   :  { %2572 = vtanh.f32 %v1006_v26  ;;  %v2075_v29 = vmul.f32 -1.442695, %v1006_v26 }
0x1474   :  { %2574 = vpow2.f32 %v2075_v29 }
0x1477   :  { %v1210_v56 = vpop.f32.mrb[10].mxu0 }
0x1478   :  { %v2305_v57 = vpop.f32.mrb[11].mxu0 }
0x147c   :  { %v2573_v28 = vpop.eup %2572 }
0x147d   :  { %1016 = vrot.lane.b32.xlu1 %v2573_v28, %s2786_s29 }
0x147e   :  { %v2575_v30 = vpop.eup %2574 }
0x147f   :  { %v1010_v31 = vadd.f32 1.0, %v2575_v30 }
0x1481   :  { %2576 = vrcp.f32 %v1010_v31 }
0x148b   :  { %v2577_v32 = vpop.eup %2576 }
0x148c   :  { %v1014_v35 = vmul.f32 %v2577_v32, %v921_v19 }
0x14ef   :  { %v1017_v33 = vpop.permute.xlu1 %1016 }
0x14f0   :  { %v1019_v34 = vmul.f32 %v2577_v32, %v1017_v33 }
0x14f2   :  { %1021 = vrot.lane.b32.xlu0 %v1019_v34, %s2786_s29 }
0x1564   :  { %v1022_v36 = vpop.permute.xlu0 %1021 }
0x1565   :  { %v1024_v37 = vadd.f32 %v1022_v36, %v1014_v35 }
0x1567   :  { %2578 = vtanh.f32 %v1024_v37 }
0x1571   :  { %v2579_v38 = vpop.eup %2578 }
0x1572   :  { %1027 = vrot.lane.b32.xlu1 %v2579_v38, %s2786_s29 }
0x15e4   :  { %v1028_v50 = vpop.permute.xlu1 %1027 }
0x15e5   :  { %v1030_v51 = vmul.f32 %v2577_v32, %v1028_v50 }
0x15e7   :  { %1032 = vrot.lane.b32.xlu0 %v1030_v51, %s2794_s5 }
0x15eb   :  { %1223 = vrot.lane.b32.xlu0 %v1139_v53, %s2786_s29 }
0x1659   :  { %v1033_v8 = vpop.permute.xlu0 %1032 }
0x165a   :  { %1035 = vst.msk [vmem:[#allocation3 + $0xe] sm:$0x3] %vm313_vm4, %v1033_v8 }
0x165d   :  { %v1224_v11 = vpop.permute.xlu0 %1223 }
0x1661   :  { %v1037_v55 = vld [vmem:[#allocation3 + $0x8] sm:$0xff] }
0x1662   :  { %2293 = vmatmul.mubr.msk.f32.vlgmr.msra.gmra.mrb[8].mxu1 %vm206_vm3, %v1037_v55 }
0x1663   :  { %2458 = vmatpush3.bf16.msra.mxu1 %v3076_v48  ;;  %2314 = vmatprep.mubr.msk.f32.mxu1 %vm2792_vm0, %v2793_v1 }
0x1664   :  { %2459 = vmatprep.subr.bf16.mxu1 %v2791_v0 }
0x1667   :  { %2461 = vmatpush3.bf16.msra.mxu1 %v3082_v52 }
0x1668   :  { %2468 = vmatprep.subr.bf16.mxu1 %v2791_v0 }
0x1735   :  { %v2294_v10 = vpop.f32.mrb[8].mxu1 }
0x1736   :  { %v1127_v59 = vadd.f32 %v2294_v10, %v2076_v58  ;;  %v1121_v60 = vpop.f32.mrb[9].mxu1 }
0x1737   :  { %v1122_v61 = vadd.f32 %v2076_v58, %v1121_v60 }
0x1738   :  { %1131 = vst [vmem:[#allocation2 + $0x8] sm:$0xff] %v1127_v59 }
0x1739   :  { %1130 = vst [vmem:[#allocation2] sm:$0xff] %v1122_v61 }
0x1740   :  { %v1140_v62 = vld [vmem:[#allocation2] sm:$0x3]  ;;  %v1243_v19 = vld [vmem:[#allocation2 + $0x2] sm:$0x3]  ;;  %v1344_v37 = vld [vmem:[#allocation2 + $0x4] sm:$0x3] }
0x1741   :  { %v1214_v63 = vadd.f32 %v1210_v56, %v1140_v62  ;;  %v1445_v56 = vld [vmem:[#allocation2 + $0x6] sm:$0x3] }
0x1743   :  { %2580 = vtanh.f32 %v1214_v63  ;;  %v2080_v3 = vmul.f32 -1.442695, %v1214_v63 }
0x1745   :  { %2582 = vpow2.f32 %v2080_v3 }
0x174d   :  { %v2581_v2 = vpop.eup %2580 }
0x174e   :  { %1228 = vrot.lane.b32.xlu1 %v2581_v2, %s2786_s29 }
0x174f   :  { %v2583_v4 = vpop.eup %2582 }
0x1750   :  { %v1218_v5 = vadd.f32 1.0, %v2583_v4 }
0x1752   :  { %2584 = vrcp.f32 %v1218_v5 }
0x175c   :  { %v2585_v6 = vpop.eup %2584 }
0x175d   :  { %v1226_v12 = vmul.f32 %v2585_v6, %v1224_v11 }
0x17c0   :  { %v1229_v7 = vpop.permute.xlu1 %1228 }
0x17c1   :  { %v1231_v9 = vmul.f32 %v2585_v6, %v1229_v7 }
0x17c3   :  { %1233 = vrot.lane.b32.xlu1 %v1231_v9, %s2786_s29 }
0x1835   :  { %v1234_v13 = vpop.permute.xlu1 %1233 }
0x1836   :  { %v1236_v14 = vadd.f32 %v1234_v13, %v1226_v12  ;;  %v1546_v13 = vld [vmem:[#allocation2 + $0x8] sm:$0x3] }
0x1838   :  { %2586 = vtanh.f32 %v1236_v14 }
0x1842   :  { %v2587_v15 = vpop.eup %2586 }
0x1843   :  { %1239 = vrot.lane.b32.xlu0 %v2587_v15, %s2786_s29 }
0x18b5   :  { %v1240_v16 = vpop.permute.xlu0 %1239 }
0x18b6   :  { %v1242_v17 = vmul.f32 %v2585_v6, %v1240_v16 }
0x18b8   :  { %1245 = vrot.lane.b32.xlu1 %v1242_v17, %s2794_s5 }
0x192a   :  { %v1246_v18 = vpop.permute.xlu1 %1245 }
0x192b   :  { %2315 = vmatmul.mubr.msk.f32.vlgmr.msra.gmra.mrb[10].mxu1 %vm206_vm3, %v1246_v18 }
0x192c   :  { %2470 = vmatpush3.bf16.msra.mxu1 %v3076_v48  ;;  %2336 = vmatprep.mubr.msk.f32.mxu1 %vm2792_vm0, %v2793_v1 }
0x192d   :  { %2471 = vmatprep.subr.bf16.mxu1 %v2791_v0 }
0x1930   :  { %2473 = vmatpush3.bf16.msra.mxu1 %v3082_v52 }
0x1931   :  { %2480 = vmatprep.subr.bf16.mxu1 %v2791_v0 }
0x19fe   :  { %v1315_v20 = vpop.f32.mrb[10].mxu1 }
0x19ff   :  { %v1319_v21 = vadd.f32 %v1315_v20, %v1243_v19  ;;  %v2316_v22 = vpop.f32.mrb[11].mxu1 }
0x1a01   :  { %2588 = vtanh.f32 %v1319_v21  ;;  %v2082_v24 = vmul.f32 -1.442695, %v1319_v21 }
0x1a03   :  { %2590 = vpow2.f32 %v2082_v24 }
0x1a0b   :  { %v2589_v23 = vpop.eup %2588 }
0x1a0c   :  { %1329 = vrot.lane.b32.xlu0 %v2589_v23, %s2786_s29 }
0x1a0d   :  { %v2591_v25 = vpop.eup %2590 }
0x1a0e   :  { %v1323_v26 = vadd.f32 1.0, %v2591_v25 }
0x1a10   :  { %2592 = vrcp.f32 %v1323_v26 }
0x1a1a   :  { %v2593_v27 = vpop.eup %2592 }
0x1a1b   :  { %v1327_v30 = vmul.f32 %v2593_v27, %v1236_v14 }
0x1a7e   :  { %v1330_v28 = vpop.permute.xlu0 %1329 }
0x1a7f   :  { %v1332_v29 = vmul.f32 %v2593_v27, %v1330_v28 }
0x1a81   :  { %1334 = vrot.lane.b32.xlu1 %v1332_v29, %s2786_s29 }
0x1af3   :  { %v1335_v31 = vpop.permute.xlu1 %1334 }
0x1af4   :  { %v1337_v32 = vadd.f32 %v1335_v31, %v1327_v30  ;;  %v1647_v31 = vld [vmem:[#allocation2 + $0xa] sm:$0x3] }
0x1af6   :  { %2594 = vtanh.f32 %v1337_v32 }
0x1b00   :  { %v2595_v33 = vpop.eup %2594 }
0x1b01   :  { %1340 = vrot.lane.b32.xlu0 %v2595_v33, %s2786_s29 }
0x1b73   :  { %v1341_v34 = vpop.permute.xlu0 %1340 }
0x1b74   :  { %v1343_v35 = vmul.f32 %v2593_v27, %v1341_v34 }
0x1b76   :  { %1346 = vrot.lane.b32.xlu1 %v1343_v35, %s2794_s5 }
0x1be8   :  { %v1347_v36 = vpop.permute.xlu1 %1346 }
0x1be9   :  { %2326 = vmatmul.mubr.msk.f32.vlgmr.msra.gmra.mrb[12].mxu0 %vm206_vm3, %v1347_v36 }
0x1bea   :  { %2476 = vmatpush3.bf16.msra.mxu0 %v3076_v48  ;;  %2347 = vmatprep.mubr.msk.f32.mxu0 %vm2792_vm0, %v2793_v1 }
0x1beb   :  { %2477 = vmatprep.subr.bf16.mxu0 %v2791_v0 }
0x1bee   :  { %2479 = vmatpush3.bf16.msra.mxu0 %v3082_v52 }
0x1bef   :  { %2486 = vmatprep.subr.bf16.mxu0 %v2791_v0 }
0x1cbc   :  { %v1416_v38 = vpop.f32.mrb[12].mxu0 }
0x1cbd   :  { %v1420_v39 = vadd.f32 %v1416_v38, %v1344_v37  ;;  %v2327_v40 = vpop.f32.mrb[13].mxu0 }
0x1cbf   :  { %2596 = vtanh.f32 %v1420_v39  ;;  %v2084_v42 = vmul.f32 -1.442695, %v1420_v39 }
0x1cc1   :  { %2598 = vpow2.f32 %v2084_v42 }
0x1cc9   :  { %v2597_v41 = vpop.eup %2596 }
0x1cca   :  { %1430 = vrot.lane.b32.xlu0 %v2597_v41, %s2786_s29 }
0x1ccb   :  { %v2599_v43 = vpop.eup %2598 }
0x1ccc   :  { %v1424_v44 = vadd.f32 1.0, %v2599_v43 }
0x1cce   :  { %2600 = vrcp.f32 %v1424_v44 }
0x1cd8   :  { %v2601_v45 = vpop.eup %2600 }
0x1cd9   :  { %v1428_v49 = vmul.f32 %v2601_v45, %v1337_v32 }
0x1d3c   :  { %v1431_v46 = vpop.permute.xlu0 %1430 }
0x1d3d   :  { %v1433_v47 = vmul.f32 %v2601_v45, %v1431_v46 }
0x1d3f   :  { %1435 = vrot.lane.b32.xlu1 %v1433_v47, %s2786_s29  ;;  %v1748_v47 = vld [vmem:[#allocation2 + $0xc] sm:$0x3] }
0x1db1   :  { %v1436_v50 = vpop.permute.xlu1 %1435 }
0x1db2   :  { %v1438_v51 = vadd.f32 %v1436_v50, %v1428_v49 }
0x1db4   :  { %2602 = vtanh.f32 %v1438_v51 }
0x1dbe   :  { %v2603_v53 = vpop.eup %2602 }
0x1dbf   :  { %1441 = vrot.lane.b32.xlu0 %v2603_v53, %s2786_s29 }
0x1e31   :  { %v1442_v54 = vpop.permute.xlu0 %1441 }
0x1e32   :  { %v1444_v8 = vmul.f32 %v2601_v45, %v1442_v54 }
0x1e34   :  { %1447 = vrot.lane.b32.xlu1 %v1444_v8, %s2794_s5 }
0x1ea6   :  { %v1448_v55 = vpop.permute.xlu1 %1447 }
0x1ea7   :  { %2337 = vmatmul.mubr.msk.f32.vlgmr.msra.gmra.mrb[12].mxu1 %vm206_vm3, %v1448_v55 }
0x1ea8   :  { %2482 = vmatpush3.bf16.msra.mxu1 %v3076_v48  ;;  %2358 = vmatprep.mubr.msk.f32.mxu1 %vm2792_vm0, %v2793_v1 }
0x1ea9   :  { %2483 = vmatprep.subr.bf16.mxu1 %v2791_v0 }
0x1eac   :  { %2485 = vmatpush3.bf16.msra.mxu1 %v3082_v52 }
0x1ead   :  { %2492 = vmatprep.subr.bf16.mxu1 %v2791_v0 }
0x1f7a   :  { %v1517_v57 = vpop.f32.mrb[12].mxu1 }
0x1f7b   :  { %v1521_v58 = vadd.f32 %v1517_v57, %v1445_v56  ;;  %v2338_v10 = vpop.f32.mrb[13].mxu1 }
0x1f7d   :  { %2604 = vtanh.f32 %v1521_v58  ;;  %v2086_v60 = vmul.f32 -1.442695, %v1521_v58 }
0x1f7f   :  { %2606 = vpow2.f32 %v2086_v60 }
0x1f87   :  { %v2605_v59 = vpop.eup %2604 }
0x1f88   :  { %1531 = vrot.lane.b32.xlu0 %v2605_v59, %s2786_s29 }
0x1f89   :  { %v2607_v61 = vpop.eup %2606 }
0x1f8a   :  { %v1525_v62 = vadd.f32 1.0, %v2607_v61 }
0x1f8c   :  { %2608 = vrcp.f32 %v1525_v62 }
0x1f96   :  { %v2609_v63 = vpop.eup %2608 }
0x1f97   :  { %v1529_v4 = vmul.f32 %v2609_v63, %v1438_v51 }
0x1ffa   :  { %v1532_v2 = vpop.permute.xlu0 %1531 }
0x1ffb   :  { %v1534_v3 = vmul.f32 %v2609_v63, %v1532_v2  ;;  %v1849_v2 = vld [vmem:[#allocation2 + $0xe] sm:$0x3] }
0x1ffd   :  { %1536 = vrot.lane.b32.xlu1 %v1534_v3, %s2786_s29 }
0x206f   :  { %v1537_v5 = vpop.permute.xlu1 %1536 }
0x2070   :  { %v1539_v6 = vadd.f32 %v1537_v5, %v1529_v4 }
0x2072   :  { %2610 = vtanh.f32 %v1539_v6 }
0x207c   :  { %v2611_v7 = vpop.eup %2610 }
0x207d   :  { %1542 = vrot.lane.b32.xlu0 %v2611_v7, %s2786_s29 }
0x20ef   :  { %v1543_v9 = vpop.permute.xlu0 %1542 }
0x20f0   :  { %v1545_v11 = vmul.f32 %v2609_v63, %v1543_v9 }
0x20f2   :  { %1548 = vrot.lane.b32.xlu1 %v1545_v11, %s2794_s5 }
0x2164   :  { %v1549_v12 = vpop.permute.xlu1 %1548 }
0x2165   :  { %2348 = vmatmul.mubr.msk.f32.vlgmr.msra.gmra.mrb[14].mxu0 %vm206_vm3, %v1549_v12 }
0x2166   :  { %2488 = vmatpush3.bf16.msra.mxu0 %v3076_v48  ;;  %2369 = vmatprep.mubr.msk.f32.mxu0 %vm2792_vm0, %v2793_v1 }
0x2167   :  { %2489 = vmatprep.subr.bf16.mxu0 %v2791_v0 }
0x216a   :  { %2491 = vmatpush3.bf16.msra.mxu0 %v3082_v52 }
0x216b   :  { %2498 = vmatprep.subr.bf16.mxu0 %v2791_v0 }
0x2238   :  { %v1618_v14 = vpop.f32.mrb[14].mxu0 }
0x2239   :  { %v1622_v15 = vadd.f32 %v1618_v14, %v1546_v13  ;;  %v2349_v16 = vpop.f32.mrb[15].mxu0 }
0x223b   :  { %2612 = vtanh.f32 %v1622_v15  ;;  %v2088_v18 = vmul.f32 -1.442695, %v1622_v15 }
0x223d   :  { %2614 = vpow2.f32 %v2088_v18  ;;  %v1950_v18 = vld [vmem:[%s3209_s9] sm:$0xff] }
0x2245   :  { %v2613_v17 = vpop.eup %2612 }
0x2246   :  { %1632 = vrot.lane.b32.xlu0 %v2613_v17, %s2786_s29 }
0x2247   :  { %v2615_v19 = vpop.eup %2614 }
0x2248   :  { %v1626_v20 = vadd.f32 1.0, %v2615_v19  ;;  %v1951_v19 = vld [vmem:[%s3209_s9 + $0x8] sm:$0xff] }
0x224a   :  { %2616 = vrcp.f32 %v1626_v20  ;;  %v1952_v20 = vld [vmem:[%s3209_s9 + $0x10] sm:$0xff] }
0x2254   :  { %v2617_v21 = vpop.eup %2616 }
0x2255   :  { %v1630_v24 = vmul.f32 %v2617_v21, %v1539_v6 }
0x22b8   :  { %v1633_v22 = vpop.permute.xlu0 %1632 }
0x22b9   :  { %v1635_v23 = vmul.f32 %v2617_v21, %v1633_v22  ;;  %v1953_v22 = vld [vmem:[%s3209_s9 + $0x18] sm:$0xff]  ;;  %s2754_s9 = scalar_lea.vmem %s2046_s0, 32 }
0x22ba   :  { %p2755_p12 = scmp.ne.s32.totalorder %s2046_s0, %s2754_s9  ;;  %p2760_p0 = scmp.lt.s32.totalorder %s2754_s9, %s2754_s9 }
0x22bb   :  { %1637 = vrot.lane.b32.xlu1 %v1635_v23, %s2786_s29  ;;  %v2502_v23 = vpack.c.bf16 %v1953_v22, %v1952_v20 }
0x22bc   :  { %p2761_p1 = por %p2760_p0, %p2759_p13 }
0x22be   :  { %p2762_p2 = pnand %p2761_p1, %p2755_p12 }
0x232d   :  { %v1638_v25 = vpop.permute.xlu1 %1637 }
0x232e   :  { %v1640_v26 = vadd.f32 %v1638_v25, %v1630_v24 }
0x2330   :  { %2618 = vtanh.f32 %v1640_v26 }
0x233a   :  { %v2619_v27 = vpop.eup %2618 }
0x233b   :  { %1643 = vrot.lane.b32.xlu0 %v2619_v27, %s2786_s29 }
0x23ad   :  { %v1644_v28 = vpop.permute.xlu0 %1643 }
0x23ae   :  { %v1646_v29 = vmul.f32 %v2617_v21, %v1644_v28  ;;  %v2499_v21 = vpack.c.bf16 %v1951_v19, %v1950_v18  ;;  %v2095_v28 = vld [vmem:[#allocation12] ss:$0 sm:$0xff] }
0x23b0   :  { %1649 = vrot.lane.b32.xlu1 %v1646_v29, %s2794_s5 }
0x2422   :  { %v1650_v30 = vpop.permute.xlu1 %1649 }
0x2423   :  { %2359 = vmatmul.mubr.msk.f32.vlgmr.msra.gmra.mrb[14].mxu1 %vm206_vm3, %v1650_v30 }
0x2424   :  { %2494 = vmatpush3.bf16.msra.mxu1 %v3076_v48  ;;  %2380 = vmatprep.mubr.msk.f32.mxu1 %vm2792_vm0, %v2793_v1 }
0x2425   :  { %2495 = vmatprep.subr.bf16.mxu1 %v2791_v0 }
0x2428   :  { %2497 = vmatpush3.bf16.msra.mxu1 %v3082_v52 }
0x24f6   :  { %v1719_v32 = vpop.f32.mrb[14].mxu1 }
0x24f7   :  { %v1723_v33 = vadd.f32 %v1719_v32, %v1647_v31  ;;  %v2360_v34 = vpop.f32.mrb[15].mxu1 }
0x24f9   :  { %2620 = vtanh.f32 %v1723_v33  ;;  %v2090_v36 = vmul.f32 -1.442695, %v1723_v33 }
0x24fb   :  { %2622 = vpow2.f32 %v2090_v36 }
0x2503   :  { %v2621_v35 = vpop.eup %2620 }
0x2504   :  { %1733 = vrot.lane.b32.xlu0 %v2621_v35, %s2786_s29 }
0x2505   :  { %v2623_v37 = vpop.eup %2622 }
0x2506   :  { %v1727_v38 = vadd.f32 1.0, %v2623_v37 }
0x2508   :  { %2624 = vrcp.f32 %v1727_v38 }
0x2512   :  { %v2625_v48 = vpop.eup %2624 }
0x2513   :  { %v1731_v41 = vmul.f32 %v2625_v48, %v1640_v26 }
0x2576   :  { %v1734_v39 = vpop.permute.xlu0 %1733 }
0x2577   :  { %v1736_v40 = vmul.f32 %v2625_v48, %v1734_v39 }
0x2579   :  { %1738 = vrot.lane.b32.xlu1 %v1736_v40, %s2786_s29 }
0x25eb   :  { %v1739_v52 = vpop.permute.xlu1 %1738 }
0x25ec   :  { %v1741_v42 = vadd.f32 %v1739_v52, %v1731_v41 }
0x25ee   :  { %2626 = vtanh.f32 %v1741_v42 }
0x25f8   :  { %v2627_v43 = vpop.eup %2626 }
0x25f9   :  { %1744 = vrot.lane.b32.xlu0 %v2627_v43, %s2786_s29 }
0x266b   :  { %v1745_v44 = vpop.permute.xlu0 %1744 }
0x266c   :  { %v1747_v45 = vmul.f32 %v2625_v48, %v1745_v44 }
0x266e   :  { %1750 = vrot.lane.b32.xlu1 %v1747_v45, %s2794_s5 }
0x26e0   :  { %v1751_v46 = vpop.permute.xlu1 %1750 }
0x26e1   :  { %2370 = vmatmul.mubr.msk.f32.vlgmr.msra.gmra.mrb[16].mxu0 %vm206_vm3, %v1751_v46 }
0x26e2   :  { %2391 = vmatprep.mubr.msk.f32.mxu0 %vm2792_vm0, %v2793_v1  ;;  %2500 = vmatpush3.bf16.msra.mxu0 %v2499_v21 }
0x26e3   :  { %2501 = vmatprep.subr.bf16.mxu0 %v2791_v0 }
0x26e6   :  { %2503 = vmatpush3.bf16.msra.mxu0 %v2502_v23 }
0x27b4   :  { %v1820_v49 = vpop.f32.mrb[16].mxu0 }
0x27b5   :  { %v1824_v50 = vadd.f32 %v1820_v49, %v1748_v47  ;;  %v2371_v51 = vpop.f32.mrb[17].mxu0 }
0x27b7   :  { %2628 = vtanh.f32 %v1824_v50  ;;  %v2092_v54 = vmul.f32 -1.442695, %v1824_v50 }
0x27b9   :  { %2630 = vpow2.f32 %v2092_v54 }
0x27c1   :  { %v2629_v53 = vpop.eup %2628 }
0x27c2   :  { %1834 = vrot.lane.b32.xlu0 %v2629_v53, %s2786_s29 }
0x27c3   :  { %v2631_v8 = vpop.eup %2630 }
0x27c4   :  { %v1828_v55 = vadd.f32 1.0, %v2631_v8 }
0x27c6   :  { %2632 = vrcp.f32 %v1828_v55 }
0x27d0   :  { %v2633_v56 = vpop.eup %2632 }
0x27d1   :  { %v1832_v10 = vmul.f32 %v2633_v56, %v1741_v42 }
0x2834   :  { %v1835_v57 = vpop.permute.xlu0 %1834 }
0x2835   :  { %v1837_v58 = vmul.f32 %v2633_v56, %v1835_v57 }
0x2837   :  { %1839 = vrot.lane.b32.xlu1 %v1837_v58, %s2786_s29 }
0x28a9   :  { %v1840_v1 = vpop.permute.xlu1 %1839 }
0x28aa   :  { %v1842_v59 = vadd.f32 %v1840_v1, %v1832_v10 }
0x28ac   :  { %2634 = vtanh.f32 %v1842_v59 }
0x28b6   :  { %v2635_v60 = vpop.eup %2634 }
0x28b7   :  { %1845 = vrot.lane.b32.xlu0 %v2635_v60, %s2786_s29 }
0x2929   :  { %v1846_v61 = vpop.permute.xlu0 %1845 }
0x292a   :  { %v1848_v62 = vmul.f32 %v2633_v56, %v1846_v61 }
0x292c   :  { %1851 = vrot.lane.b32.xlu1 %v1848_v62, %s2794_s5 }
0x299e   :  { %v1852_v63 = vpop.permute.xlu1 %1851 }
0x299f   :  { %2381 = vmatmul.mubr.msk.f32.vlgmr.msra.gmra.mrb[16].mxu1 %vm206_vm3, %v1852_v63 }
0x2a72   :  { %v1921_v3 = vpop.f32.mrb[16].mxu1 }
0x2a73   :  { %v1925_v4 = vadd.f32 %v1921_v3, %v1849_v2  ;;  %v2382_v5 = vpop.f32.mrb[17].mxu1 }
0x2a75   :  { %2636 = vtanh.f32 %v1925_v4  ;;  %v2094_v7 = vmul.f32 -1.442695, %v1925_v4 }
0x2a77   :  { %2638 = vpow2.f32 %v2094_v7 }
0x2a7f   :  { %v2637_v6 = vpop.eup %2636 }
0x2a80   :  { %1935 = vrot.lane.b32.xlu0 %v2637_v6, %s2786_s29 }
0x2a81   :  { %v2639_v9 = vpop.eup %2638 }
0x2a82   :  { %v1929_v11 = vadd.f32 1.0, %v2639_v9 }
0x2a84   :  { %2640 = vrcp.f32 %v1929_v11 }
0x2a8e   :  { %v2641_v12 = vpop.eup %2640 }
0x2a8f   :  { %v1933_v15 = vmul.f32 %v2641_v12, %v1842_v59 }
0x2af2   :  { %v1936_v13 = vpop.permute.xlu0 %1935 }
0x2af3   :  { %v1938_v14 = vmul.f32 %v2641_v12, %v1936_v13 }
0x2af5   :  { %1940 = vrot.lane.b32.xlu1 %v1938_v14, %s2786_s29 }
0x2b67   :  { %v1941_v16 = vpop.permute.xlu1 %1940 }
0x2b68   :  { %v1943_v17 = vadd.f32 %v1941_v16, %v1933_v15 }
0x2b6a   :  { %2642 = vtanh.f32 %v1943_v17 }
0x2b74   :  { %v2643_v24 = vpop.eup %2642 }
0x2b75   :  { %1946 = vrot.lane.b32.xlu0 %v2643_v24, %s2786_s29 }
0x2be7   :  { %v1947_v25 = vpop.permute.xlu0 %1946 }
0x2be8   :  { %v1949_v26 = vmul.f32 %v2641_v12, %v1947_v25 }
0x2bea   :  { %1962 = vrot.lane.b32.xlu1 %v1949_v26, %s2794_s5 }
0x2c5c   :  { %v1963_v27 = vpop.permute.xlu1 %1962 }
0x2c5d   :  { %2392 = vmatmul.mubr.msk.f32.vlgmr.msra.gmra.mrb[18].mxu0 %vm206_vm3, %v1963_v27 }
0x2d30   :  { %v2032_v29 = vpop.f32.mrb[18].mxu0 }
0x2d31   :  { %v2033_v30 = vadd.f32 %v2095_v28, %v2032_v29  ;;  %v2393_v31 = vpop.f32.mrb[19].mxu0 }
0x2d33   :  { %v2036_v32 = vmax.f32 %v2033_v30, 0.0 }
0x2d35   :  { %2038 = vst.msk [vmem:[#allocation13] sm:$0x3] %vm2037_vm5, %v2036_v32 }
0x2d36   :  { %2765 = shalt.err (!%p2762_p2)
}
0x2d37   :  { %s2766_s5 = scalar_lea.hbm %s3211_s11, 32 }
0x2d38   :  { %p2767_p3 = scmp.ne.s32.totalorder %s3211_s11, %s2766_s5  ;;  %p2770_p4 = scmp.lt.u32.totalorder %s2766_s5, %s3211_s11 }
0x2d3a   :  { %p2772_p5 = pnand %p2770_p4, %p2767_p3 }
0x2d3c   :  { %2775 = shalt.err (!%p2772_p5)
}
0x2d3d   :  { %2048 = dma.vmem_to_hbm [thread:$0]  %s2046_s0, 32, %s3211_s11, [#allocation6]  }
0x2d3e   :  { %2782 = dma.done.wait [#allocation6], 32  }
0x2d3f   :  { %2783 = vsyncadd [#allocation6], 4294967264 }
0x2d40   :  { %2052 = vsyncpa [#allocation5], 1 }
0x2d41   :  { %2053 = vsyncpa [#allocation8], 1 }
0x2d42   :  { %2054 = vsyncpa [#allocation11], 1 }
0x2d43   :  { %2055 = vsyncpa [#allocation6], 1 }

</bundles_post_ra>
